<compile_context>
chip_gen: v6e
topology: v6e:2x2x1
jax: 0.10.0
libtpu: 0.0.40
codegen_flags: <defaults>
</compile_context>

<pallas_src>
import jax
import jax.numpy as jnp
from jax import lax
from jax.experimental import pallas as pl
from jax.experimental.pallas import tpu as pltpu


# ---------------------------------------------------------------------------
# Pass 1: polyphase ConvTranspose2d tile + per-tile BatchNorm partial stats
# ---------------------------------------------------------------------------
def _convt_poly_kernel(xm_ref, xh_ref, w_ref, b_ref, out_ref, stats_ref):
    # xm_ref   : (Nb, TH, W+1, Cin)  bf16  rows [t*TH, t*TH+TH) of the zero-padded input
    # xh_ref   : (Nb, 1,  W+1, Cin)  bf16  halo row t*TH+TH (zero pad row for last tile)
    # w_ref    : (4, Cin, 4*Cout)    bf16  polyphase weight blocks (dr,dc)=(00,01,10,11)
    # b_ref    : (1, 4*Cout)         f32   bias tiled over the 4 output phases
    # out_ref  : (Nb, TH, W, 4*Cout) bf16  phase-packed conv output (lane-dense)
    # stats_ref: (1, 1, 2, 4*Cout)   f32   row 0 = sum, row 1 = sum of squares
    Nb, TH, Wp1, Cin = xm_ref.shape
    W = Wp1 - 1
    C4 = w_ref.shape[-1]

    w0, w1, w2, w3 = w_ref[0], w_ref[1], w_ref[2], w_ref[3]   # (Cin, 4*Cout) bf16 each
    b = b_ref[...]                                            # (1, 4*Cout)   f32
    xm = xm_ref[...]                                          # (Nb, TH, W+1, Cin)
    xh = xh_ref[...]                                          # (Nb, 1,  W+1, Cin)

    def mm(a, w):
        return jnp.dot(a, w, preferred_element_type=jnp.float32)

    # ---- bottom output row of the tile (a = TH-1): needs the halo row -------
    xb0 = xm[:, TH - 1, 0:W, :].reshape(Nb * W, Cin)    # x[a,   b  ]
    xb1 = xm[:, TH - 1, 1:, :].reshape(Nb * W, Cin)     # x[a,   b+1]
    hb0 = xh[:, 0, 0:W, :].reshape(Nb * W, Cin)         # x[a+1, b  ]
    hb1 = xh[:, 0, 1:, :].reshape(Nb * W, Cin)          # x[a+1, b+1]
    acc_bot = mm(xb0, w0) + mm(xb1, w1) + mm(hb0, w2) + mm(hb1, w3) + b
    out_ref[:, TH - 1:TH, :, :] = acc_bot.reshape(Nb, 1, W, C4).astype(out_ref.dtype)
    s = jnp.sum(acc_bot, axis=0, keepdims=True)
    ss = jnp.sum(acc_bot * acc_bot, axis=0, keepdims=True)

    # ---- top output rows (a = 0 .. TH-2): all four taps from the main tile ---
    if TH > 1:
        M = Nb * (TH - 1) * W
        xt00 = xm[:, 0:TH - 1, 0:W, :].reshape(M, Cin)
        xt01 = xm[:, 0:TH - 1, 1:, :].reshape(M, Cin)
        xt10 = xm[:, 1:TH, 0:W, :].reshape(M, Cin)
        xt11 = xm[:, 1:TH, 1:, :].reshape(M, Cin)
        acc_top = mm(xt00, w0) + mm(xt01, w1) + mm(xt10, w2) + mm(xt11, w3) + b
        out_ref[:, 0:TH - 1, :, :] = acc_top.reshape(Nb, TH - 1, W, C4).astype(out_ref.dtype)
        s = s + jnp.sum(acc_top, axis=0, keepdims=True)
        ss = ss + jnp.sum(acc_top * acc_top, axis=0, keepdims=True)

    # Direct row stores (no zero-padding / concat assembly).
    stats_ref[0, 0, 0:1, :] = s
    stats_ref[0, 0, 1:2, :] = ss


# ---------------------------------------------------------------------------
# Pass 2: tiled BatchNorm normalize (precomputed scale/shift) + ReLU
# ---------------------------------------------------------------------------
def _bn_relu_kernel(y_ref, sc_ref, sh_ref, out_ref):
    y = y_ref[...].astype(jnp.float32)            # (Nb, TH, W, 4*Cout)
    sc = sc_ref[...].reshape(1, 1, 1, -1)
    sh = sh_ref[...].reshape(1, 1, 1, -1)
    out_ref[...] = jnp.maximum(y * sc + sh, 0.0).astype(out_ref.dtype)


# ---------------------------------------------------------------------------
# Wrapper
# ---------------------------------------------------------------------------
def _pick_batch_block(n, th, w, target_rows=256):
    # Smallest divisor of the batch such that each grid step feeds >= target_rows
    # rows into the MXU (fills the 256-wide M dimension on v6e/v7x).
    for d in range(1, n + 1):
        if n % d == 0 and d * th * w >= target_rows:
            return d
    return n


def dec_block_forward(x_nchw, weight, bias, gamma, beta, *, eps=1e-5,
                      row_tile=8, out_dtype=jnp.float32,
                      vmem_limit_bytes=32 * 1024 * 1024,
                      single_buffer_weights=None):
    """ReLU(BN_train(ConvTranspose2d_{k3,s2,p1,op1}(x))), NCHW in / NCHW out."""
    N, Cin, H, W = x_nchw.shape
    Cin_w, Cout, K, K2 = weight.shape
    assert Cin == Cin_w and K == 3 and K2 == 3
    OH, OW = 2 * H, 2 * W
    C4 = 4 * Cout

    # Row tiling; when row_tile does not divide H (7/14/28 VGG stages), fall back to
    # whole-image tiles and recover MXU M-fill by blocking Nb batch images per step.
    TH = row_tile if (row_tile is not None and H % row_tile == 0) else H
    n_tiles = H // TH
    Nb = _pick_batch_block(N, TH, W)
    n_bblocks = N // Nb

    # --- cheap glue: NCHW -> NHWC, +1 zero row/col halo, bf16 cast -----------
    x = jnp.transpose(x_nchw, (0, 2, 3, 1))                        # (N, H, W, Cin)
    xp = jnp.pad(x, ((0, 0), (0, 1), (0, 1), (0, 0))).astype(jnp.bfloat16)

    # Polyphase weight blocks:
    #   w_blk[(dr,dc)][ci, (2*pr+pc)*Cout + co] = weight[ci, co, pr+1-2dr, pc+1-2dc]
    # (zero when the tap index falls outside the 3x3 kernel).
    wf = weight.astype(jnp.float32)
    zeros = jnp.zeros((Cin, Cout), jnp.float32)
    blocks = []
    for dr in (0, 1):
        for dc in (0, 1):
            cols = []
            for pr in (0, 1):
                for pc in (0, 1):
                    kh, kw = pr + 1 - 2 * dr, pc + 1 - 2 * dc
                    cols.append(wf[:, :, kh, kw] if (0 <= kh < K and 0 <= kw < K)
                                else zeros)
            blocks.append(jnp.concatenate(cols, axis=1))           # (Cin, 4*Cout)
    w_blk = jnp.stack(blocks, axis=0).astype(jnp.bfloat16)         # (4, Cin, 4*Cout)
    b_big = jnp.tile(bias.astype(jnp.float32), 4).reshape(1, C4)

    # Single-buffer the resident block weight when it is large (v7x VMEM headroom).
    if single_buffer_weights is None:
        single_buffer_weights = (w_blk.size * 2) >= (4 * 1024 * 1024)
    w_spec_kwargs = {}
    if single_buffer_weights:
        w_spec_kwargs["pipeline_mode"] = pl.Buffered(1)
    w_spec = pl.BlockSpec((4, Cin, C4), lambda n, t: (0, 0, 0), **w_spec_kwargs)

    cparams = pltpu.CompilerParams(
        dimension_semantics=("parallel", "parallel"),
        vmem_limit_bytes=vmem_limit_bytes)

    # --- Pallas pass 1: polyphase transposed conv + per-tile BN partials -----
    conv_slab, stats = pl.pallas_call(
        _convt_poly_kernel,
        grid=(n_bblocks, n_tiles),
        in_specs=[
            pl.BlockSpec((Nb, TH, W + 1, Cin), lambda n, t: (n, t, 0, 0)),
            pl.BlockSpec((Nb, 1, W + 1, Cin), lambda n, t: (n, (t + 1) * TH, 0, 0)),
            w_spec,
            pl.BlockSpec((1, C4), lambda n, t: (0, 0)),
        ],
        out_specs=(
            pl.BlockSpec((Nb, TH, W, C4), lambda n, t: (n, t, 0, 0)),
            pl.BlockSpec((1, 1, 2, C4), lambda n, t: (n, t, 0, 0)),
        ),
        out_shape=(
            jax.ShapeDtypeStruct((N, H, W, C4), jnp.bfloat16),          # bf16 slab
            jax.ShapeDtypeStruct((n_bblocks, n_tiles, 2, C4), jnp.float32),
        ),
        compiler_params=cparams,
    )(xp, xp, w_blk, b_big)

    # --- tiny O(Cout) cross-tile reduction + BN scale/shift (plain JAX) ------
    count = float(N * OH * OW)
    tot = jnp.sum(stats[:, :, 0, :], axis=(0, 1)).reshape(4, Cout).sum(axis=0)
    tot2 = jnp.sum(stats[:, :, 1, :], axis=(0, 1)).reshape(4, Cout).sum(axis=0)
    mean = tot / count
    var = jnp.maximum(tot2 / count - mean * mean, 0.0)      # biased batch variance
    scale = gamma.astype(jnp.float32) * lax.rsqrt(var + eps)
    shift = beta.astype(jnp.float32) - mean * scale
    scale_l = jnp.tile(scale, 4).reshape(1, C4)
    shift_l = jnp.tile(shift, 4).reshape(1, C4)

    # --- Pallas pass 2: tiled normalize + ReLU on the phase-packed slab ------
    alias = {0: 0} if out_dtype == conv_slab.dtype else {}   # reuse HBM slab in place
    out_slab = pl.pallas_call(
        _bn_relu_kernel,
        grid=(n_bblocks, n_tiles),
        in_specs=[
            pl.BlockSpec((Nb, TH, W, C4), lambda n, t: (n, t, 0, 0)),
            pl.BlockSpec((1, C4), lambda n, t: (0, 0)),
            pl.BlockSpec((1, C4), lambda n, t: (0, 0)),
        ],
        out_specs=pl.BlockSpec((Nb, TH, W, C4), lambda n, t: (n, t, 0, 0)),
        out_shape=jax.ShapeDtypeStruct((N, H, W, C4), out_dtype),
        input_output_aliases=alias,
        compiler_params=cparams,
    )(conv_slab, scale_l, shift_l)

    # --- depth-to-space + NHWC -> NCHW as ONE composed transpose -------------
    y = out_slab.reshape(N, H, W, 2, 2, Cout)
    y = jnp.transpose(y, (0, 5, 1, 3, 2, 4)).reshape(N, Cout, OH, OW)
    return y


# ---------------------------------------------------------------------------
# Pure-JAX reference (same math via lax.conv_general_dilated)
# ---------------------------------------------------------------------------
def _reference(x_nchw, weight, bias, gamma, beta, *, eps=1e-5,
               matmul_dtype=jnp.float32, slab_dtype=None):
    N, Cin, H, W = x_nchw.shape
    Cout, K = weight.shape[1], weight.shape[2]
    x = jnp.transpose(x_nchw, (0, 2, 3, 1)).astype(matmul_dtype)
    w_conv = jnp.transpose(weight[:, :, ::-1, ::-1], (2, 3, 0, 1)).astype(matmul_dtype)
    pb = K - 1 - 1               # padding=1
    pa = K - 1 - 1 + 1           # + output_padding=1
    y = lax.conv_general_dilated(
        x, w_conv, window_strides=(1, 1),
        padding=[(pb, pa), (pb, pa)], lhs_dilation=(2, 2),
        dimension_numbers=("NHWC", "HWIO", "NHWC"),
        preferred_element_type=jnp.float32)
    y = y + bias.reshape(1, 1, 1, Cout).astype(jnp.float32)
    mean = jnp.mean(y, axis=(0, 1, 2), keepdims=True)          # stats on pre-rounded y
    var = jnp.mean((y - mean) ** 2, axis=(0, 1, 2), keepdims=True)
    if slab_dtype is not None:                                  # mirror bf16 slab rounding
        y = y.astype(slab_dtype).astype(jnp.float32)
    y = (y - mean) * lax.rsqrt(var + eps) * gamma.reshape(1, 1, 1, -1) \
        + beta.reshape(1, 1, 1, -1)
    y = jnp.maximum(y, 0.0)
    return jnp.transpose(y, (0, 3, 1, 2))


if __name__ == "__main__":
    # batch=2, Cin=8, Cout=16, spatial 16x16 -> 32x32
    # (2 row-tiles per image + Nb=2 batch blocking -> exercises halo + multi-tile grid).
    N, Cin, Cout, H, W, K = 2, 8, 16, 16, 16, 3
    key = jax.random.PRNGKey(0)
    kx, kw, kb, kg, kbe = jax.random.split(key, 5)

    x = jax.random.normal(kx, (N, Cin, H, W), jnp.float32)
    weight = 0.1 * jax.random.normal(kw, (Cin, Cout, K, K), jnp.float32)  # ConvTranspose2d.weight
    bias = 0.1 * jax.random.normal(kb, (Cout,), jnp.float32)              # ConvTranspose2d.bias
    gamma = 1.0 + 0.1 * jax.random.normal(kg, (Cout,), jnp.float32)       # BatchNorm2d.weight
    beta = 0.1 * jax.random.normal(kbe, (Cout,), jnp.float32)             # BatchNorm2d.bias

    out = jax.block_until_ready(jax.jit(dec_block_forward)(x, weight, bias, gamma, beta))
    assert out.shape == (N, Cout, 2 * H, 2 * W)

    # Matched-precision reference (bf16 conv operands, f32 accum/stats, bf16 slab rounding).
    ref_matched = jax.block_until_ready(
        _reference(x, weight, bias, gamma, beta,
                   matmul_dtype=jnp.bfloat16, slab_dtype=jnp.bfloat16))
    err_m = float(jnp.max(jnp.abs(out - ref_matched)))
    assert err_m < 3e-3, f"max abs error vs matched reference too large: {err_m}"

    # Full-f32 reference (bounds bf16 input/weight/slab rounding effects).
    ref_f32 = jax.block_until_ready(
        _reference(x, weight, bias, gamma, beta, matmul_dtype=jnp.float32))
    err_f = float(jnp.max(jnp.abs(out - ref_f32)))
    assert err_f < 1e-1, f"max abs error vs f32 reference too large: {err_f}"

    print("KERNEL_OK")
</pallas_src>

<mosaic_0001>
module attributes {stable_mosaic.version = 11 : i64} {
  func.func @_convt_poly_kernel(%arg0: i32, %arg1: i32, %arg2: memref<2x8x17x8xbf16, #tpu.memory_space<vmem>>, %arg3: memref<2x1x17x8xbf16, #tpu.memory_space<vmem>>, %arg4: memref<4x8x64xbf16, #tpu.memory_space<vmem>>, %arg5: memref<1x64xf32, #tpu.memory_space<vmem>>, %arg6: memref<2x8x16x64xbf16, #tpu.memory_space<vmem>>, %arg7: memref<1x1x2x64xf32, #tpu.memory_space<vmem>>) attributes {dimension_semantics = [#tpu.dimension_semantics<parallel>, #tpu.dimension_semantics<parallel>], iteration_bounds = array<i64: 1, 2>, scalar_prefetch = 0 : i64, scratch_operands = 0 : i64, tpu.core_type = #tpu.core_type<tc>, window_params = [{transform_indices = @transform_0, window_bounds = array<i64: 2, 8, 17, 8>}, {transform_indices = @transform_1, window_bounds = array<i64: 2, 1, 17, 8>}, {pipeline_mode = #tpu.pipeline_mode<synchronous>, transform_indices = @transform_2, window_bounds = array<i64: 4, 8, 64>}, {pipeline_mode = #tpu.pipeline_mode<synchronous>, transform_indices = @transform_3, window_bounds = array<i64: 1, 64>}, {transform_indices = @transform_4, window_bounds = array<i64: 2, 8, 16, 64>}, {transform_indices = @transform_5, window_bounds = array<i64: 1, 1, 2, 64>}]} {
    %c0 = arith.constant 0 : index
    %c0_0 = arith.constant 0 : index
    %c0_1 = arith.constant 0 : index
    %0 = vector.load %arg4[%c0, %c0_0, %c0_1] : memref<4x8x64xbf16, #tpu.memory_space<vmem>>, vector<1x8x64xbf16>
    %1 = vector.shape_cast %0 : vector<1x8x64xbf16> to vector<8x64xbf16>
    %c1 = arith.constant 1 : index
    %c0_2 = arith.constant 0 : index
    %c0_3 = arith.constant 0 : index
    %2 = vector.load %arg4[%c1, %c0_2, %c0_3] : memref<4x8x64xbf16, #tpu.memory_space<vmem>>, vector<1x8x64xbf16>
    %3 = vector.shape_cast %2 : vector<1x8x64xbf16> to vector<8x64xbf16>
    %c2 = arith.constant 2 : index
    %c0_4 = arith.constant 0 : index
    %c0_5 = arith.constant 0 : index
    %4 = vector.load %arg4[%c2, %c0_4, %c0_5] : memref<4x8x64xbf16, #tpu.memory_space<vmem>>, vector<1x8x64xbf16>
    %5 = vector.shape_cast %4 : vector<1x8x64xbf16> to vector<8x64xbf16>
    %c3 = arith.constant 3 : index
    %c0_6 = arith.constant 0 : index
    %c0_7 = arith.constant 0 : index
    %6 = vector.load %arg4[%c3, %c0_6, %c0_7] : memref<4x8x64xbf16, #tpu.memory_space<vmem>>, vector<1x8x64xbf16>
    %7 = vector.shape_cast %6 : vector<1x8x64xbf16> to vector<8x64xbf16>
    %c0_8 = arith.constant 0 : index
    %c0_9 = arith.constant 0 : index
    %8 = vector.load %arg5[%c0_8, %c0_9] : memref<1x64xf32, #tpu.memory_space<vmem>>, vector<1x64xf32>
    %c0_10 = arith.constant 0 : index
    %c0_11 = arith.constant 0 : index
    %c0_12 = arith.constant 0 : index
    %c0_13 = arith.constant 0 : index
    %9 = vector.load %arg2[%c0_10, %c0_11, %c0_12, %c0_13] : memref<2x8x17x8xbf16, #tpu.memory_space<vmem>>, vector<2x8x17x8xbf16>
    %c0_14 = arith.constant 0 : index
    %c0_15 = arith.constant 0 : index
    %c0_16 = arith.constant 0 : index
    %c0_17 = arith.constant 0 : index
    %10 = vector.load %arg3[%c0_14, %c0_15, %c0_16, %c0_17] : memref<2x1x17x8xbf16, #tpu.memory_space<vmem>>, vector<2x1x17x8xbf16>
    %11 = vector.extract_strided_slice %9 {offsets = [0, 7, 0, 0], sizes = [2, 1, 16, 8], strides = [1, 1, 1, 1]} : vector<2x8x17x8xbf16> to vector<2x1x16x8xbf16>
    %12 = vector.shape_cast %11 : vector<2x1x16x8xbf16> to vector<2x16x8xbf16>
    %13 = vector.shape_cast %12 : vector<2x16x8xbf16> to vector<32x8xbf16>
    %14 = vector.extract_strided_slice %9 {offsets = [0, 7, 1, 0], sizes = [2, 1, 16, 8], strides = [1, 1, 1, 1]} : vector<2x8x17x8xbf16> to vector<2x1x16x8xbf16>
    %15 = vector.shape_cast %14 : vector<2x1x16x8xbf16> to vector<2x16x8xbf16>
    %16 = vector.shape_cast %15 : vector<2x16x8xbf16> to vector<32x8xbf16>
    %17 = vector.extract_strided_slice %10 {offsets = [0, 0, 0, 0], sizes = [2, 1, 16, 8], strides = [1, 1, 1, 1]} : vector<2x1x17x8xbf16> to vector<2x1x16x8xbf16>
    %18 = vector.shape_cast %17 : vector<2x1x16x8xbf16> to vector<2x16x8xbf16>
    %19 = vector.shape_cast %18 : vector<2x16x8xbf16> to vector<32x8xbf16>
    %20 = vector.extract_strided_slice %10 {offsets = [0, 0, 1, 0], sizes = [2, 1, 16, 8], strides = [1, 1, 1, 1]} : vector<2x1x17x8xbf16> to vector<2x1x16x8xbf16>
    %21 = vector.shape_cast %20 : vector<2x1x16x8xbf16> to vector<2x16x8xbf16>
    %22 = vector.shape_cast %21 : vector<2x16x8xbf16> to vector<32x8xbf16>
    %cst = arith.constant dense<0.000000e+00> : vector<32x64xf32>
    %23 = tpu.matmul %13, %1, %cst {dimension_numbers = #tpu.dot_dimension_numbers<[1], [0], [0], [1], [0, 0, 1, 1], [], []>} : vector<32x8xbf16>, vector<8x64xbf16>, vector<32x64xf32> -> vector<32x64xf32>
    %cst_18 = arith.constant dense<0.000000e+00> : vector<32x64xf32>
    %24 = tpu.matmul %16, %3, %cst_18 {dimension_numbers = #tpu.dot_dimension_numbers<[1], [0], [0], [1], [0, 0, 1, 1], [], []>} : vector<32x8xbf16>, vector<8x64xbf16>, vector<32x64xf32> -> vector<32x64xf32>
    %25 = arith.addf %23, %24 : vector<32x64xf32>
    %cst_19 = arith.constant dense<0.000000e+00> : vector<32x64xf32>
    %26 = tpu.matmul %19, %5, %cst_19 {dimension_numbers = #tpu.dot_dimension_numbers<[1], [0], [0], [1], [0, 0, 1, 1], [], []>} : vector<32x8xbf16>, vector<8x64xbf16>, vector<32x64xf32> -> vector<32x64xf32>
    %27 = arith.addf %25, %26 : vector<32x64xf32>
    %cst_20 = arith.constant dense<0.000000e+00> : vector<32x64xf32>
    %28 = tpu.matmul %22, %7, %cst_20 {dimension_numbers = #tpu.dot_dimension_numbers<[1], [0], [0], [1], [0, 0, 1, 1], [], []>} : vector<32x8xbf16>, vector<8x64xbf16>, vector<32x64xf32> -> vector<32x64xf32>
    %29 = arith.addf %27, %28 : vector<32x64xf32>
    %30 = vector.broadcast %8 : vector<1x64xf32> to vector<32x64xf32>
    %31 = arith.addf %29, %30 : vector<32x64xf32>
    %32 = vector.shape_cast %31 : vector<32x64xf32> to vector<2x1x16x64xf32>
    %33 = arith.truncf %32 : vector<2x1x16x64xf32> to vector<2x1x16x64xbf16>
    %c0_21 = arith.constant 0 : index
    %c7 = arith.constant 7 : index
    %c0_22 = arith.constant 0 : index
    %c0_23 = arith.constant 0 : index
    %34 = vector.load %arg6[%c0_21, %c7, %c0_22, %c0_23] : memref<2x8x16x64xbf16, #tpu.memory_space<vmem>>, vector<2x1x16x64xbf16>
    tpu.vector_store %arg6[%c0_21, %c7, %c0_22, %c0_23], %33 {strides = array<i32>} : memref<2x8x16x64xbf16, #tpu.memory_space<vmem>>, vector<2x1x16x64xbf16>,
    %cst_24 = arith.constant dense<0.000000e+00> : vector<64xf32>
    %35 = vector.multi_reduction <add>, %31, %cst_24 [0] : vector<32x64xf32> to vector<64xf32>
    %36 = vector.shape_cast %35 : vector<64xf32> to vector<1x64xf32>
    %37 = arith.mulf %31, %31 : vector<32x64xf32>
    %cst_25 = arith.constant dense<0.000000e+00> : vector<64xf32>
    %38 = vector.multi_reduction <add>, %37, %cst_25 [0] : vector<32x64xf32> to vector<64xf32>
    %39 = vector.shape_cast %38 : vector<64xf32> to vector<1x64xf32>
    %40 = vector.extract_strided_slice %9 {offsets = [0, 0, 0, 0], sizes = [2, 7, 16, 8], strides = [1, 1, 1, 1]} : vector<2x8x17x8xbf16> to vector<2x7x16x8xbf16>
    %41 = vector.shape_cast %40 : vector<2x7x16x8xbf16> to vector<224x8xbf16>
    %42 = vector.extract_strided_slice %9 {offsets = [0, 0, 1, 0], sizes = [2, 7, 16, 8], strides = [1, 1, 1, 1]} : vector<2x8x17x8xbf16> to vector<2x7x16x8xbf16>
    %43 = vector.shape_cast %42 : vector<2x7x16x8xbf16> to vector<224x8xbf16>
    %44 = vector.extract_strided_slice %9 {offsets = [0, 1, 0, 0], sizes = [2, 7, 16, 8], strides = [1, 1, 1, 1]} : vector<2x8x17x8xbf16> to vector<2x7x16x8xbf16>
    %45 = vector.shape_cast %44 : vector<2x7x16x8xbf16> to vector<224x8xbf16>
    %46 = vector.extract_strided_slice %9 {offsets = [0, 1, 1, 0], sizes = [2, 7, 16, 8], strides = [1, 1, 1, 1]} : vector<2x8x17x8xbf16> to vector<2x7x16x8xbf16>
    %47 = vector.shape_cast %46 : vector<2x7x16x8xbf16> to vector<224x8xbf16>
    %cst_26 = arith.constant dense<0.000000e+00> : vector<224x64xf32>
    %48 = tpu.matmul %41, %1, %cst_26 {dimension_numbers = #tpu.dot_dimension_numbers<[1], [0], [0], [1], [0, 0, 1, 1], [], []>} : vector<224x8xbf16>, vector<8x64xbf16>, vector<224x64xf32> -> vector<224x64xf32>
    %cst_27 = arith.constant dense<0.000000e+00> : vector<224x64xf32>
    %49 = tpu.matmul %43, %3, %cst_27 {dimension_numbers = #tpu.dot_dimension_numbers<[1], [0], [0], [1], [0, 0, 1, 1], [], []>} : vector<224x8xbf16>, vector<8x64xbf16>, vector<224x64xf32> -> vector<224x64xf32>
    %50 = arith.addf %48, %49 : vector<224x64xf32>
    %cst_28 = arith.constant dense<0.000000e+00> : vector<224x64xf32>
    %51 = tpu.matmul %45, %5, %cst_28 {dimension_numbers = #tpu.dot_dimension_numbers<[1], [0], [0], [1], [0, 0, 1, 1], [], []>} : vector<224x8xbf16>, vector<8x64xbf16>, vector<224x64xf32> -> vector<224x64xf32>
    %52 = arith.addf %50, %51 : vector<224x64xf32>
    %cst_29 = arith.constant dense<0.000000e+00> : vector<224x64xf32>
    %53 = tpu.matmul %47, %7, %cst_29 {dimension_numbers = #tpu.dot_dimension_numbers<[1], [0], [0], [1], [0, 0, 1, 1], [], []>} : vector<224x8xbf16>, vector<8x64xbf16>, vector<224x64xf32> -> vector<224x64xf32>
    %54 = arith.addf %52, %53 : vector<224x64xf32>
    %55 = vector.broadcast %8 : vector<1x64xf32> to vector<224x64xf32>
    %56 = arith.addf %54, %55 : vector<224x64xf32>
    %57 = vector.shape_cast %56 : vector<224x64xf32> to vector<2x7x16x64xf32>
    %58 = arith.truncf %57 : vector<2x7x16x64xf32> to vector<2x7x16x64xbf16>
    %c0_30 = arith.constant 0 : index
    %c0_31 = arith.constant 0 : index
    %c0_32 = arith.constant 0 : index
    %c0_33 = arith.constant 0 : index
    %59 = vector.load %arg6[%c0_30, %c0_31, %c0_32, %c0_33] : memref<2x8x16x64xbf16, #tpu.memory_space<vmem>>, vector<2x7x16x64xbf16>
    tpu.vector_store %arg6[%c0_30, %c0_31, %c0_32, %c0_33], %58 {strides = array<i32>} : memref<2x8x16x64xbf16, #tpu.memory_space<vmem>>, vector<2x7x16x64xbf16>,
    %cst_34 = arith.constant dense<0.000000e+00> : vector<64xf32>
    %60 = vector.multi_reduction <add>, %56, %cst_34 [0] : vector<224x64xf32> to vector<64xf32>
    %61 = vector.shape_cast %60 : vector<64xf32> to vector<1x64xf32>
    %62 = arith.addf %36, %61 : vector<1x64xf32>
    %63 = arith.mulf %56, %56 : vector<224x64xf32>
    %cst_35 = arith.constant dense<0.000000e+00> : vector<64xf32>
    %64 = vector.multi_reduction <add>, %63, %cst_35 [0] : vector<224x64xf32> to vector<64xf32>
    %65 = vector.shape_cast %64 : vector<64xf32> to vector<1x64xf32>
    %66 = arith.addf %39, %65 : vector<1x64xf32>
    %c0_36 = arith.constant 0 : index
    %c0_37 = arith.constant 0 : index
    %c0_38 = arith.constant 0 : index
    %c0_39 = arith.constant 0 : index
    %67 = vector.load %arg7[%c0_36, %c0_37, %c0_38, %c0_39] : memref<1x1x2x64xf32, #tpu.memory_space<vmem>>, vector<1x1x1x64xf32>
    %68 = vector.shape_cast %67 : vector<1x1x1x64xf32> to vector<1x64xf32>
    %69 = vector.shape_cast %62 : vector<1x64xf32> to vector<1x1x1x64xf32>
    tpu.vector_store %arg7[%c0_36, %c0_37, %c0_38, %c0_39], %69 {strides = array<i32>} : memref<1x1x2x64xf32, #tpu.memory_space<vmem>>, vector<1x1x1x64xf32>,
    %c0_40 = arith.constant 0 : index
    %c0_41 = arith.constant 0 : index
    %c1_42 = arith.constant 1 : index
    %c0_43 = arith.constant 0 : index
    %70 = vector.load %arg7[%c0_40, %c0_41, %c1_42, %c0_43] : memref<1x1x2x64xf32, #tpu.memory_space<vmem>>, vector<1x1x1x64xf32>
    %71 = vector.shape_cast %70 : vector<1x1x1x64xf32> to vector<1x64xf32>
    %72 = vector.shape_cast %66 : vector<1x64xf32> to vector<1x1x1x64xf32>
    tpu.vector_store %arg7[%c0_40, %c0_41, %c1_42, %c0_43], %72 {strides = array<i32>} : memref<1x1x2x64xf32, #tpu.memory_space<vmem>>, vector<1x1x1x64xf32>,
    return
  }
  func.func @transform_0(%arg0: i32, %arg1: i32) -> (i32, i32, i32, i32) {
    %c0_i32 = arith.constant 0 : i32
    %c0_i32_0 = arith.constant 0 : i32
    %c0_i32_1 = arith.constant 0 : i32
    return %arg0, %arg1, %c0_i32, %c0_i32_0 : i32, i32, i32, i32
  }
  func.func @transform_1(%arg0: i32, %arg1: i32) -> (i32, i32, i32, i32) {
    %c1_i32 = arith.constant 1 : i32
    %0 = arith.addi %arg1, %c1_i32 : i32
    %c8_i32 = arith.constant 8 : i32
    %1 = arith.muli %0, %c8_i32 : i32
    %c0_i32 = arith.constant 0 : i32
    %c0_i32_0 = arith.constant 0 : i32
    %c0_i32_1 = arith.constant 0 : i32
    return %arg0, %1, %c0_i32, %c0_i32_0 : i32, i32, i32, i32
  }
  func.func @transform_2(%arg0: i32, %arg1: i32) -> (i32, i32, i32) {
    %c0_i32 = arith.constant 0 : i32
    %c0_i32_0 = arith.constant 0 : i32
    %c0_i32_1 = arith.constant 0 : i32
    %c0_i32_2 = arith.constant 0 : i32
    return %c0_i32, %c0_i32_0, %c0_i32_1 : i32, i32, i32
  }
  func.func @transform_3(%arg0: i32, %arg1: i32) -> (i32, i32) {
    %c0_i32 = arith.constant 0 : i32
    %c0_i32_0 = arith.constant 0 : i32
    %c0_i32_1 = arith.constant 0 : i32
    return %c0_i32, %c0_i32_0 : i32, i32
  }
  func.func @transform_4(%arg0: i32, %arg1: i32) -> (i32, i32, i32, i32) {
    %c0_i32 = arith.constant 0 : i32
    %c0_i32_0 = arith.constant 0 : i32
    %c0_i32_1 = arith.constant 0 : i32
    return %arg0, %arg1, %c0_i32, %c0_i32_0 : i32, i32, i32, i32
  }
  func.func @transform_5(%arg0: i32, %arg1: i32) -> (i32, i32, i32, i32) {
    %c0_i32 = arith.constant 0 : i32
    %c0_i32_0 = arith.constant 0 : i32
    %c0_i32_1 = arith.constant 0 : i32
    return %arg0, %arg1, %c0_i32, %c0_i32_0 : i32, i32, i32, i32
  }
}

module attributes {stable_mosaic.version = 11 : i64} {
  func.func @_bn_relu_kernel(%arg0: i32, %arg1: i32, %arg2: memref<2x8x16x64xbf16, #tpu.memory_space<vmem>>, %arg3: memref<1x64xf32, #tpu.memory_space<vmem>>, %arg4: memref<1x64xf32, #tpu.memory_space<vmem>>, %arg5: memref<2x8x16x64xf32, #tpu.memory_space<vmem>>) attributes {dimension_semantics = [#tpu.dimension_semantics<parallel>, #tpu.dimension_semantics<parallel>], iteration_bounds = array<i64: 1, 2>, scalar_prefetch = 0 : i64, scratch_operands = 0 : i64, tpu.core_type = #tpu.core_type<tc>, window_params = [{transform_indices = @transform_0, window_bounds = array<i64: 2, 8, 16, 64>}, {pipeline_mode = #tpu.pipeline_mode<synchronous>, transform_indices = @transform_1, window_bounds = array<i64: 1, 64>}, {pipeline_mode = #tpu.pipeline_mode<synchronous>, transform_indices = @transform_2, window_bounds = array<i64: 1, 64>}, {transform_indices = @transform_3, window_bounds = array<i64: 2, 8, 16, 64>}]} {
    %c0 = arith.constant 0 : index
    %c0_0 = arith.constant 0 : index
    %c0_1 = arith.constant 0 : index
    %c0_2 = arith.constant 0 : index
    %0 = vector.load %arg2[%c0, %c0_0, %c0_1, %c0_2] : memref<2x8x16x64xbf16, #tpu.memory_space<vmem>>, vector<2x8x16x64xbf16>
    %1 = arith.extf %0 : vector<2x8x16x64xbf16> to vector<2x8x16x64xf32>
    %c0_3 = arith.constant 0 : index
    %c0_4 = arith.constant 0 : index
    %2 = vector.load %arg3[%c0_3, %c0_4] : memref<1x64xf32, #tpu.memory_space<vmem>>, vector<1x64xf32>
    %3 = vector.shape_cast %2 : vector<1x64xf32> to vector<1x1x1x64xf32>
    %c0_5 = arith.constant 0 : index
    %c0_6 = arith.constant 0 : index
    %4 = vector.load %arg4[%c0_5, %c0_6] : memref<1x64xf32, #tpu.memory_space<vmem>>, vector<1x64xf32>
    %5 = vector.shape_cast %4 : vector<1x64xf32> to vector<1x1x1x64xf32>
    %6 = vector.broadcast %3 : vector<1x1x1x64xf32> to vector<2x8x16x64xf32>
    %7 = arith.mulf %1, %6 : vector<2x8x16x64xf32>
    %8 = vector.broadcast %5 : vector<1x1x1x64xf32> to vector<2x8x16x64xf32>
    %9 = arith.addf %7, %8 : vector<2x8x16x64xf32>
    %cst = arith.constant 0.000000e+00 : f32
    %10 = vector.broadcast %cst : f32 to vector<2x8x16x64xf32>
    %11 = arith.maximumf %9, %10 : vector<2x8x16x64xf32>
    %c0_7 = arith.constant 0 : index
    %c0_8 = arith.constant 0 : index
    %c0_9 = arith.constant 0 : index
    %c0_10 = arith.constant 0 : index
    %12 = vector.load %arg5[%c0_7, %c0_8, %c0_9, %c0_10] : memref<2x8x16x64xf32, #tpu.memory_space<vmem>>, vector<2x8x16x64xf32>
    tpu.vector_store %arg5[%c0_7, %c0_8, %c0_9, %c0_10], %11 {strides = array<i32>} : memref<2x8x16x64xf32, #tpu.memory_space<vmem>>, vector<2x8x16x64xf32>,
    return
  }
  func.func @transform_0(%arg0: i32, %arg1: i32) -> (i32, i32, i32, i32) {
    %c0_i32 = arith.constant 0 : i32
    %c0_i32_0 = arith.constant 0 : i32
    %c0_i32_1 = arith.constant 0 : i32
    return %arg0, %arg1, %c0_i32, %c0_i32_0 : i32, i32, i32, i32
  }
  func.func @transform_1(%arg0: i32, %arg1: i32) -> (i32, i32) {
    %c0_i32 = arith.constant 0 : i32
    %c0_i32_0 = arith.constant 0 : i32
    %c0_i32_1 = arith.constant 0 : i32
    return %c0_i32, %c0_i32_0 : i32, i32
  }
  func.func @transform_2(%arg0: i32, %arg1: i32) -> (i32, i32) {
    %c0_i32 = arith.constant 0 : i32
    %c0_i32_0 = arith.constant 0 : i32
    %c0_i32_1 = arith.constant 0 : i32
    return %c0_i32, %c0_i32_0 : i32, i32
  }
  func.func @transform_3(%arg0: i32, %arg1: i32) -> (i32, i32, i32, i32) {
    %c0_i32 = arith.constant 0 : i32
    %c0_i32_0 = arith.constant 0 : i32
    %c0_i32_1 = arith.constant 0 : i32
    return %arg0, %arg1, %c0_i32, %c0_i32_0 : i32, i32, i32, i32
  }
}

</mosaic_0001>

<bundles_post_ra>
// kernel: tile.18
= control target key start
LH: loop header
LB: loop body
LE: loop exit
PB: predicated region body
PF: predicated region fallthrough
CT: control target
= control target key end

     0   :  { %s22_s0 = inlined_call_operand.vmem [shape: f32[16], index: 0, kind: input, shape index: {}]   ;;  %s23_s1 = inlined_call_operand.vmem [shape: f32[4,16], index: 1, kind: output, shape index: {}]  }
   0x1   :  { %v4_v0 = vld [vmem:[%s22_s0] ss:$0 sm:$0xff] }
   0x2   :  { %5 = vst [vmem:[%s23_s1] sm:$0xf] %v4_v0 }

// kernel: tile.19
= control target key start
LH: loop header
LB: loop body
LE: loop exit
PB: predicated region body
PF: predicated region fallthrough
CT: control target
= control target key end

     0   :  { %vm8_vm0 = vcmask 130048   ;;  %s40_s8 = smov 16   ;;  %s41_s9 = smov 32   ;;  %vm14_vm1 = vcmask 523648   ;;  %vm20_vm2 = vcmask 392448   ;;  %vm26_vm3 = vcmask 261248   ;;  %s58_s0 = inlined_call_operand.vmem [shape: f32[4,16], index: 0, kind: input, shape index: {}]   ;;  %s59_s1 = inlined_call_operand.vmem [shape: f32[1,64], index: 1, kind: output, shape index: {}]  }
   0x1   :  { %v5_v0 = vld [vmem:[%s58_s0] sm:$0xf]  ;;  %s39_s0 = smov 48  }
   0x2   :  { %6 = vst [vmem:[#allocation1] sm:$0xf] %v5_v0 }
   0x9   :  { %v11_v1 = vld [vmem:[#allocation1 + $0x3] sm:$0x1]   ;;  %v23_v2 = vld [vmem:[#allocation1 + $0x1] sm:$0x1]   ;;  %v7_v3 = vld [vmem:[#allocation1] sm:$0x1]  }
   0xa   :  { %12 = vrot.lane.b32.xlu0 %v11_v1, %s39_s0  ;;  %24 = vrot.lane.b32.xlu1 %v23_v2, %s40_s8  ;;  %v17_v4 = vld [vmem:[#allocation1 + $0x2] sm:$0x1]   ;;  %9 = vst.msk [vmem:[#allocation0] sm:$0x1] %vm8_vm0, %v7_v3  }
   0xe   :  { %18 = vrot.lane.b32.xlu0 %v17_v4, %s41_s9 }
  0x7c   :  { %v13_v5 = vpop.permute.xlu0 %12   ;;  %v25_v6 = vpop.permute.xlu1 %24  }
  0x7d   :  { %15 = vst.msk [vmem:[#allocation0] sm:$0x1] %vm14_vm1, %v13_v5  }
  0x80   :  { %v19_v7 = vpop.permute.xlu0 %18  }
  0x81   :  { %21 = vst.msk [vmem:[#allocation0] sm:$0x1] %vm20_vm2, %v19_v7  }
  0x82   :  { %27 = vst.msk [vmem:[#allocation0] sm:$0x1] %vm26_vm3, %v25_v6  }
  0x89   :  { %v32_v8 = vld [vmem:[#allocation0] sm:$0x1] }
  0x8a   :  { %35 = vst [vmem:[%s59_s1] sm:$0x1] %v32_v8 }

// kernel: dec_block_forward.3
= control target key start
LH: loop header
LB: loop body
LE: loop exit
PB: predicated region body
PF: predicated region fallthrough
CT: control target
= control target key end

     0   :  { %s1008_s12 = smov 0   ;;  %s1010_s13 = smov 0   ;;  %s1322_s0 = inlined_call_operand.vmem [shape: bf16[2,16,16,64], index: 0, kind: input, shape index: {}]   ;;  %s1323_s1 = inlined_call_operand.vmem [shape: f32[1,64], index: 1, kind: input, shape index: {}]   ;;  %s1324_s2 = inlined_call_operand.vmem [shape: f32[1,64], index: 2, kind: input, shape index: {}]   ;;  %s1325_s3 = inlined_call_operand.vmem [shape: f32[2,16,16,64], index: 3, kind: output, shape index: {}]  }
   0x1   :  { %s1012_s14 = smov 0   ;;  %s1014_s15 = smov 0  }
   0x2   :  { %s1016_s16 = smov 0  }
   0x3 LB: > { %s22_s17 = sadd.s32 1, %s982_s15  ;;  %s806_s18 = sadd.s32 4294967295, %s986_s16   ;;  %s986_s16 = sphi %s1016_s16, %s13_s16   ;;  %s982_s15 = sphi %s1014_s15, %s1330_s15   ;;  %s978_s14 = sphi %s1012_s14, %s1329_s14   ;;  %s974_s13 = sphi %s1010_s13, %s1328_s13   ;;  %s970_s12 = sphi %s1008_s12, %s1327_s12  }
   0x4   : > { %p23_p0 = scmp.ge.s32.totalorder %s22_s17, 2  ;;  %p41_p1 = scmp.ne.s32.totalorder %s974_s13, %s970_s12 }
   0x5   : > { %p42_p2 = scmp.eq.s32.totalorder %s986_s16, 0  ;;  %p115_p4 = scmp.eq.s32.totalorder %s806_s18, 1 }
   0x6   : > { %s1332_s17 = smov (%p23_p0, %s22_s17), 0  ;;  %s34_s20 = sadd.s32 1, %s974_s13 }
   0x7   : > { %p43_p3 = por %p42_p2, %p41_p1  ;;  %s30_s19 = ssub.s32 %s982_s15, %s1332_s17 }
   0x8   : > { %p32_p5 = scmp.eq.s32.totalorder %s30_s19, 0  ;;  %p1043_p6 = por %p115_p4, %p41_p1 }
   0x9   : > { %p809_p7 = scmp.ge.s32.totalorder %s986_s16, 2 }
   0xa   : > { %s1048_s22 = scalar_select %p32_p5, %s974_s13, %s34_s20  }
   0xb   : > { %143 = sbr.rel (%p809_p7) target bundleno = 28 (0x1c), region = 24 }
  0x10   : > { %146 = sbr.rel (!%p43_p3) target bundleno = 28 (0x1c), region = 28  ;;  %s148_s23 = sand.u32 (%p43_p3), 1, %s974_s13  }
  0x11   : > { %s826_s24 = sshll.u32 (%p43_p3), %s982_s15, 6  ;;  %s810_s25 = sshll.u32 (%p43_p3), %s148_s23, 7 }
  0x12   : > { %s1056_s28 = scalar_lea.vmem (%p43_p3), %s1322_s0, %s826_s24  ;;  %s150_s29 = scalar_lea.vmem (%p43_p3), [#allocation2], %s810_s25 }
  0x13   : > { %v174_v0 = vld [vmem:[%s1056_s28] sm:$0xff] (%p43_p3)   ;;  %v178_v1 = vld [vmem:[%s1056_s28 + $0x8] sm:$0xff] (%p43_p3)   ;;  %v182_v2 = vld [vmem:[%s1056_s28 + $0x10] sm:$0xff] (%p43_p3)  }
  0x14   : > { %175 = vst [vmem:[%s150_s29] sm:$0xff] (%p43_p3), %v174_v0   ;;  %179 = vst [vmem:[%s150_s29 + $0x8] sm:$0xff] (%p43_p3), %v178_v1   ;;  %v186_v3 = vld [vmem:[%s1056_s28 + $0x18] sm:$0xff] (%p43_p3)   ;;  %v190_v4 = vld [vmem:[%s1056_s28 + $0x20] sm:$0xff] (%p43_p3)  }
  0x15   : > { %183 = vst [vmem:[%s150_s29 + $0x10] sm:$0xff] %v182_v2   ;;  %v194_v5 = vld [vmem:[%s1056_s28 + $0x28] sm:$0xff]   ;;  %187 = vst [vmem:[%s150_s29 + $0x18] sm:$0xff] %v186_v3   ;;  %v198_v6 = vld [vmem:[%s1056_s28 + $0x30] sm:$0xff]  }
  0x16   : > { %191 = vst [vmem:[%s150_s29 + $0x20] sm:$0xff] %v190_v4   ;;  %195 = vst [vmem:[%s150_s29 + $0x28] sm:$0xff] %v194_v5   ;;  %v202_v7 = vld [vmem:[%s1056_s28 + $0x38] sm:$0xff]   ;;  %v206_v8 = vld [vmem:[%s1056_s28 + $0x80] sm:$0xff]  }
  0x17   : > { %199 = vst [vmem:[%s150_s29 + $0x30] sm:$0xff] %v198_v6   ;;  %203 = vst [vmem:[%s150_s29 + $0x38] sm:$0xff] %v202_v7   ;;  %v210_v9 = vld [vmem:[%s1056_s28 + $0x88] sm:$0xff]   ;;  %v214_v10 = vld [vmem:[%s1056_s28 + $0x90] sm:$0xff]  }
  0x18   : > { %207 = vst [vmem:[%s150_s29 + $0x40] sm:$0xff] %v206_v8   ;;  %v218_v11 = vld [vmem:[%s1056_s28 + $0x98] sm:$0xff]   ;;  %211 = vst [vmem:[%s150_s29 + $0x48] sm:$0xff] %v210_v9   ;;  %v222_v12 = vld [vmem:[%s1056_s28 + $0xa0] sm:$0xff]  }
  0x19   : > { %215 = vst [vmem:[%s150_s29 + $0x50] sm:$0xff] %v214_v10   ;;  %219 = vst [vmem:[%s150_s29 + $0x58] sm:$0xff] %v218_v11   ;;  %v226_v13 = vld [vmem:[%s1056_s28 + $0xa8] sm:$0xff]   ;;  %v230_v14 = vld [vmem:[%s1056_s28 + $0xb0] sm:$0xff]  }
  0x1a   : > { %223 = vst [vmem:[%s150_s29 + $0x60] sm:$0xff] %v222_v12   ;;  %227 = vst [vmem:[%s150_s29 + $0x68] sm:$0xff] %v226_v13   ;;  %v234_v15 = vld [vmem:[%s1056_s28 + $0xb8] sm:$0xff]  }
  0x1b   : > { %231 = vst [vmem:[%s150_s29 + $0x70] sm:$0xff] %v230_v14   ;;  %235 = vst [vmem:[%s150_s29 + $0x78] sm:$0xff] %v234_v15  }
  0x1c PF: > { %p814_p8 = scmp.ge.s32.totalorder %s986_s16, 1  ;;  %p324_p9 = scmp.lt.s32.totalorder %s986_s16, 3 }
  0x1e   : > { %p325_p10 = pnand %p814_p8, %p324_p9 }
  0x1f   : > { %s331_s30 = sand.u32 (!%p325_p10), 1, %s970_s12  }
  0x20   : > { %328 = sbr.rel (%p325_p10) target bundleno = 85 (0x55), region = 69  ;;  %s815_s4 = sshll.u32 (!%p325_p10), %s331_s30, 7 }
  0x21   : > { %s1082_s7 = scalar_lea.vmem (!%p325_p10), [#allocation2], %s815_s4  ;;  %s816_s10 = sshll.u32 (!%p325_p10), %s331_s30, 8 }
  0x22   : > { %s1113_s11 = scalar_lea.vmem (!%p325_p10), [#allocation3], %s816_s10 }
  0x25   : > { %v1080_v16 = vld [vmem:[%s1323_s1] ss:$0 sm:$0xff]  ;;  %vm531_vm0 = vcmask 523264   ;;  %v893_v18 = vld [vmem:[%s1082_s7 + $0x8] sm:$0xff]   ;;  %v894_v19 = vld [vmem:[%s1082_s7 + $0x10] sm:$0xff]   ;;  %s828_s12 = sshll.u32 (%p1043_p6), %s978_s14, 7 }
  0x26   : > { %v830_v17 = vld [vmem:[%s1082_s7] sm:$0xff]   ;;  %v835_v22 = vunpack.c.l.bf16 %v893_v18  ;;  %v836_v23 = vunpack.c.h.bf16 %v893_v18  ;;  %v895_v24 = vld [vmem:[%s1082_s7 + $0x18] sm:$0xff]   ;;  %v839_v26 = vunpack.c.l.bf16 %v894_v19  ;;  %v840_v27 = vunpack.c.h.bf16 %v894_v19  ;;  %v897_v47 = vld [vmem:[%s1082_s7 + $0x28] sm:$0xff]   ;;  %s1244_s20 = scalar_lea.vmem (%p1043_p6), %s1325_s3, %s828_s12 }
  0x27   : > { %v831_v20 = vunpack.c.l.bf16 %v830_v17  ;;  %v832_v21 = vunpack.c.h.bf16 %v830_v17  ;;  %v1091_v25 = vld [vmem:[%s1324_s2] ss:$0 sm:$0xff]  ;;  %v843_v28 = vunpack.c.l.bf16 %v895_v24  ;;  %v844_v29 = vunpack.c.h.bf16 %v895_v24  ;;  %v898_v52 = vld [vmem:[%s1082_s7 + $0x30] sm:$0xff]   ;;  %v899_v53 = vld [vmem:[%s1082_s7 + $0x38] sm:$0xff]  }
  0x28   : > { %v431_v32 = vmul.f32 %v835_v22, %v1080_v16  ;;  %v432_v33 = vmul.f32 %v836_v23, %v1080_v16  ;;  %v433_v34 = vmul.f32 %v839_v26, %v1080_v16  ;;  %v434_v35 = vmul.f32 %v840_v27, %v1080_v16  ;;  %v896_v46 = vld [vmem:[%s1082_s7 + $0x20] sm:$0xff]   ;;  %v902_v26 = vld [vmem:[%s1082_s7 + $0x50] sm:$0xff]   ;;  %v903_v27 = vld [vmem:[%s1082_s7 + $0x58] sm:$0xff]  }
  0x29   : > { %v429_v30 = vmul.f32 %v831_v20, %v1080_v16  ;;  %v430_v31 = vmul.f32 %v832_v21, %v1080_v16  ;;  %v435_v36 = vmul.f32 %v843_v28, %v1080_v16  ;;  %v436_v37 = vmul.f32 %v844_v29, %v1080_v16  ;;  %v900_v19 = vld [vmem:[%s1082_s7 + $0x40] sm:$0xff]   ;;  %v901_v20 = vld [vmem:[%s1082_s7 + $0x48] sm:$0xff]  }
  0x2a   : > { %v469_v40 = vadd.f32 %v1091_v25, %v431_v32  ;;  %v470_v41 = vadd.f32 %v1091_v25, %v432_v33  ;;  %v471_v42 = vadd.f32 %v1091_v25, %v433_v34  ;;  %v472_v43 = vadd.f32 %v1091_v25, %v434_v35 }
  0x2b   : > { %v467_v38 = vadd.f32 %v1091_v25, %v429_v30  ;;  %v468_v39 = vadd.f32 %v1091_v25, %v430_v31  ;;  %v473_v44 = vadd.f32 %v1091_v25, %v435_v36  ;;  %v474_v45 = vadd.f32 %v1091_v25, %v436_v37 }
  0x2c   : > { %v501_v50 = vmax.f32 %v469_v40, 0.0  ;;  %v502_v51 = vmax.f32 %v470_v41, 0.0  ;;  %v503_v54 = vmax.f32 %v471_v42, 0.0  ;;  %v504_v55 = vmax.f32 %v472_v43, 0.0 }
  0x2d   : > { %v499_v48 = vmax.f32 %v467_v38, 0.0  ;;  %v500_v49 = vmax.f32 %v468_v39, 0.0  ;;  %v505_v56 = vmax.f32 %v473_v44, 0.0  ;;  %v506_v57 = vmax.f32 %v474_v45, 0.0 }
  0x2e   : > { %534 = vst.msk [vmem:[%s1113_s11 + $0x10] sm:$0xff] %vm531_vm0, %v501_v50  ;;  %535 = vst.msk [vmem:[%s1113_s11 + $0x18] sm:$0xff] %vm531_vm0, %v502_v51  ;;  %v847_v58 = vunpack.c.l.bf16 %v896_v46  ;;  %v848_v59 = vunpack.c.h.bf16 %v896_v46  ;;  %v851_v60 = vunpack.c.l.bf16 %v897_v47  ;;  %v852_v61 = vunpack.c.h.bf16 %v897_v47 }
  0x2f   : > { %532 = vst.msk [vmem:[%s1113_s11] sm:$0xff] %vm531_vm0, %v499_v48  ;;  %533 = vst.msk [vmem:[%s1113_s11 + $0x8] sm:$0xff] %vm531_vm0, %v500_v49  ;;  %v855_v62 = vunpack.c.l.bf16 %v898_v52  ;;  %v856_v63 = vunpack.c.h.bf16 %v898_v52  ;;  %v859_v0 = vunpack.c.l.bf16 %v899_v53  ;;  %v860_v1 = vunpack.c.h.bf16 %v899_v53 }
  0x30   : > { %536 = vst.msk [vmem:[%s1113_s11 + $0x20] sm:$0xff] %vm531_vm0, %v503_v54  ;;  %537 = vst.msk [vmem:[%s1113_s11 + $0x28] sm:$0xff] %vm531_vm0, %v504_v55  ;;  %v437_v2 = vmul.f32 %v847_v58, %v1080_v16  ;;  %v438_v3 = vmul.f32 %v848_v59, %v1080_v16  ;;  %v439_v4 = vmul.f32 %v851_v60, %v1080_v16  ;;  %v863_v32 = vunpack.c.l.bf16 %v900_v19 }
  0x31   : > { %538 = vst.msk [vmem:[%s1113_s11 + $0x30] sm:$0xff] %vm531_vm0, %v505_v56  ;;  %539 = vst.msk [vmem:[%s1113_s11 + $0x38] sm:$0xff] %vm531_vm0, %v506_v57  ;;  %v440_v5 = vmul.f32 %v852_v61, %v1080_v16  ;;  %v441_v6 = vmul.f32 %v855_v62, %v1080_v16  ;;  %v442_v7 = vmul.f32 %v856_v63, %v1080_v16  ;;  %v864_v33 = vunpack.c.h.bf16 %v900_v19  ;;  %v904_v56 = vld [vmem:[%s1082_s7 + $0x60] sm:$0xff]   ;;  %v905_v57 = vld [vmem:[%s1082_s7 + $0x68] sm:$0xff]  }
  0x32   : > { %v443_v8 = vmul.f32 %v859_v0, %v1080_v16  ;;  %v444_v9 = vmul.f32 %v860_v1, %v1080_v16  ;;  %v475_v10 = vadd.f32 %v1091_v25, %v437_v2  ;;  %v476_v11 = vadd.f32 %v1091_v25, %v438_v3  ;;  %v906_v62 = vld [vmem:[%s1082_s7 + $0x70] sm:$0xff]   ;;  %v907_v63 = vld [vmem:[%s1082_s7 + $0x78] sm:$0xff]  }
  0x33   : > { %v477_v12 = vadd.f32 %v1091_v25, %v439_v4  ;;  %v478_v13 = vadd.f32 %v1091_v25, %v440_v5  ;;  %v479_v14 = vadd.f32 %v1091_v25, %v441_v6  ;;  %v480_v15 = vadd.f32 %v1091_v25, %v442_v7 }
  0x34   : > { %v481_v17 = vadd.f32 %v1091_v25, %v443_v8  ;;  %v482_v18 = vadd.f32 %v1091_v25, %v444_v9  ;;  %v507_v21 = vmax.f32 %v475_v10, 0.0  ;;  %v508_v22 = vmax.f32 %v476_v11, 0.0 }
  0x35   : > { %v509_v23 = vmax.f32 %v477_v12, 0.0  ;;  %v510_v24 = vmax.f32 %v478_v13, 0.0  ;;  %v511_v28 = vmax.f32 %v479_v14, 0.0  ;;  %v512_v29 = vmax.f32 %v480_v15, 0.0 }
  0x36   : > { %v513_v30 = vmax.f32 %v481_v17, 0.0  ;;  %v514_v31 = vmax.f32 %v482_v18, 0.0  ;;  %540 = vst.msk [vmem:[%s1113_s11 + $0x40] sm:$0xff] %vm531_vm0, %v507_v21  ;;  %541 = vst.msk [vmem:[%s1113_s11 + $0x48] sm:$0xff] %vm531_vm0, %v508_v22  ;;  %v867_v34 = vunpack.c.l.bf16 %v901_v20  ;;  %v868_v35 = vunpack.c.h.bf16 %v901_v20 }
  0x37   : > { %542 = vst.msk [vmem:[%s1113_s11 + $0x50] sm:$0xff] %vm531_vm0, %v509_v23  ;;  %543 = vst.msk [vmem:[%s1113_s11 + $0x58] sm:$0xff] %vm531_vm0, %v510_v24  ;;  %v871_v36 = vunpack.c.l.bf16 %v902_v26  ;;  %v872_v37 = vunpack.c.h.bf16 %v902_v26  ;;  %v875_v38 = vunpack.c.l.bf16 %v903_v27  ;;  %v876_v39 = vunpack.c.h.bf16 %v903_v27 }
  0x38   : > { %544 = vst.msk [vmem:[%s1113_s11 + $0x60] sm:$0xff] %vm531_vm0, %v511_v28  ;;  %545 = vst.msk [vmem:[%s1113_s11 + $0x68] sm:$0xff] %vm531_vm0, %v512_v29  ;;  %v445_v40 = vmul.f32 %v863_v32, %v1080_v16  ;;  %v446_v41 = vmul.f32 %v864_v33, %v1080_v16  ;;  %v447_v42 = vmul.f32 %v867_v34, %v1080_v16  ;;  %v879_v4 = vunpack.c.l.bf16 %v904_v56 }
  0x39   : > { %546 = vst.msk [vmem:[%s1113_s11 + $0x70] sm:$0xff] %vm531_vm0, %v513_v30  ;;  %547 = vst.msk [vmem:[%s1113_s11 + $0x78] sm:$0xff] %vm531_vm0, %v514_v31  ;;  %v448_v43 = vmul.f32 %v868_v35, %v1080_v16  ;;  %v449_v44 = vmul.f32 %v871_v36, %v1080_v16  ;;  %v450_v45 = vmul.f32 %v872_v37, %v1080_v16  ;;  %v880_v5 = vunpack.c.h.bf16 %v904_v56  ;;  %v670_v37 = vld [vmem:[%s1113_s11 + $0x8] sm:$0xff] (%p1043_p6) }
  0x3a   : > { %v451_v46 = vmul.f32 %v875_v38, %v1080_v16  ;;  %v452_v47 = vmul.f32 %v876_v39, %v1080_v16  ;;  %v483_v48 = vadd.f32 %v1091_v25, %v445_v40  ;;  %v484_v49 = vadd.f32 %v1091_v25, %v446_v41  ;;  %v672_v38 = vld [vmem:[%s1113_s11 + $0x10] sm:$0xff] (%p1043_p6)  ;;  %v674_v39 = vld [vmem:[%s1113_s11 + $0x18] sm:$0xff] (%p1043_p6)  ;;  %v676_v40 = vld [vmem:[%s1113_s11 + $0x20] sm:$0xff] (%p1043_p6)  ;;  %671 = vst [vmem:[%s1244_s20 + $0x8] sm:$0xff] (%p1043_p6), %v670_v37 }
  0x3b   : > { %v485_v50 = vadd.f32 %v1091_v25, %v447_v42  ;;  %v486_v51 = vadd.f32 %v1091_v25, %v448_v43  ;;  %v487_v52 = vadd.f32 %v1091_v25, %v449_v44  ;;  %v488_v53 = vadd.f32 %v1091_v25, %v450_v45  ;;  %v678_v41 = vld [vmem:[%s1113_s11 + $0x28] sm:$0xff] (%p1043_p6)  ;;  %673 = vst [vmem:[%s1244_s20 + $0x10] sm:$0xff] (%p1043_p6), %v672_v38  ;;  %v680_v42 = vld [vmem:[%s1113_s11 + $0x30] sm:$0xff] (%p1043_p6)  ;;  %v682_v43 = vld [vmem:[%s1113_s11 + $0x38] sm:$0xff] (%p1043_p6) }
  0x3c   : > { %v489_v54 = vadd.f32 %v1091_v25, %v451_v46  ;;  %v490_v55 = vadd.f32 %v1091_v25, %v452_v47  ;;  %v515_v58 = vmax.f32 %v483_v48, 0.0  ;;  %v516_v59 = vmax.f32 %v484_v49, 0.0  ;;  %675 = vst [vmem:[%s1244_s20 + $0x18] sm:$0xff] (%p1043_p6), %v674_v39  ;;  %677 = vst [vmem:[%s1244_s20 + $0x20] sm:$0xff] (%p1043_p6), %v676_v40 }
  0x3d   : > { %v517_v60 = vmax.f32 %v485_v50, 0.0  ;;  %v518_v61 = vmax.f32 %v486_v51, 0.0  ;;  %v519_v0 = vmax.f32 %v487_v52, 0.0  ;;  %v520_v1 = vmax.f32 %v488_v53, 0.0  ;;  %679 = vst [vmem:[%s1244_s20 + $0x28] sm:$0xff] (%p1043_p6), %v678_v41  ;;  %v684_v44 = vld [vmem:[%s1113_s11 + $0x40] sm:$0xff] (%p1043_p6) }
  0x3e   : > { %v521_v2 = vmax.f32 %v489_v54, 0.0  ;;  %v522_v3 = vmax.f32 %v490_v55, 0.0  ;;  %548 = vst.msk [vmem:[%s1113_s11 + $0x80] sm:$0xff] %vm531_vm0, %v515_v58  ;;  %549 = vst.msk [vmem:[%s1113_s11 + $0x88] sm:$0xff] %vm531_vm0, %v516_v59  ;;  %v883_v6 = vunpack.c.l.bf16 %v905_v57  ;;  %v884_v7 = vunpack.c.h.bf16 %v905_v57  ;;  %v686_v45 = vld [vmem:[%s1113_s11 + $0x48] sm:$0xff] (%p1043_p6)  ;;  %v688_v46 = vld [vmem:[%s1113_s11 + $0x50] sm:$0xff] (%p1043_p6) }
  0x3f   : > { %550 = vst.msk [vmem:[%s1113_s11 + $0x90] sm:$0xff] %vm531_vm0, %v517_v60  ;;  %551 = vst.msk [vmem:[%s1113_s11 + $0x98] sm:$0xff] %vm531_vm0, %v518_v61  ;;  %v887_v8 = vunpack.c.l.bf16 %v906_v62  ;;  %v888_v9 = vunpack.c.h.bf16 %v906_v62  ;;  %v891_v10 = vunpack.c.l.bf16 %v907_v63  ;;  %v892_v11 = vunpack.c.h.bf16 %v907_v63  ;;  %v690_v47 = vld [vmem:[%s1113_s11 + $0x58] sm:$0xff] (%p1043_p6)  ;;  %v692_v48 = vld [vmem:[%s1113_s11 + $0x60] sm:$0xff] (%p1043_p6) }
  0x40   : > { %552 = vst.msk [vmem:[%s1113_s11 + $0xa0] sm:$0xff] %vm531_vm0, %v519_v0  ;;  %553 = vst.msk [vmem:[%s1113_s11 + $0xa8] sm:$0xff] %vm531_vm0, %v520_v1  ;;  %v453_v12 = vmul.f32 %v879_v4, %v1080_v16  ;;  %v454_v13 = vmul.f32 %v880_v5, %v1080_v16  ;;  %v455_v14 = vmul.f32 %v883_v6, %v1080_v16  ;;  %v694_v49 = vld [vmem:[%s1113_s11 + $0x68] sm:$0xff] (%p1043_p6)  ;;  %v696_v50 = vld [vmem:[%s1113_s11 + $0x70] sm:$0xff] (%p1043_p6) }
  0x41   : > { %554 = vst.msk [vmem:[%s1113_s11 + $0xb0] sm:$0xff] %vm531_vm0, %v521_v2  ;;  %555 = vst.msk [vmem:[%s1113_s11 + $0xb8] sm:$0xff] %vm531_vm0, %v522_v3  ;;  %v456_v15 = vmul.f32 %v884_v7, %v1080_v16  ;;  %v457_v17 = vmul.f32 %v887_v8, %v1080_v16  ;;  %v458_v18 = vmul.f32 %v888_v9, %v1080_v16  ;;  %v698_v51 = vld [vmem:[%s1113_s11 + $0x78] sm:$0xff] (%p1043_p6) }
  0x42   : > { %v459_v19 = vmul.f32 %v891_v10, %v1080_v16  ;;  %v460_v20 = vmul.f32 %v892_v11, %v1080_v16  ;;  %v491_v21 = vadd.f32 %v1091_v25, %v453_v12  ;;  %v492_v22 = vadd.f32 %v1091_v25, %v454_v13  ;;  %681 = vst [vmem:[%s1244_s20 + $0x30] sm:$0xff] (%p1043_p6), %v680_v42 }
  0x43   : > { %v493_v23 = vadd.f32 %v1091_v25, %v455_v14  ;;  %v494_v24 = vadd.f32 %v1091_v25, %v456_v15  ;;  %v495_v26 = vadd.f32 %v1091_v25, %v457_v17  ;;  %v496_v27 = vadd.f32 %v1091_v25, %v458_v18  ;;  %683 = vst [vmem:[%s1244_s20 + $0x38] sm:$0xff] (%p1043_p6), %v682_v43 }
  0x44   : > { %v497_v16 = vadd.f32 %v1091_v25, %v459_v19  ;;  %v498_v28 = vadd.f32 %v1091_v25, %v460_v20  ;;  %v523_v29 = vmax.f32 %v491_v21, 0.0  ;;  %v524_v30 = vmax.f32 %v492_v22, 0.0  ;;  %v668_v25 = vld [vmem:[%s1113_s11] sm:$0xff] (%p1043_p6)  ;;  %685 = vst [vmem:[%s1244_s20 + $0x40] sm:$0xff] (%p1043_p6), %v684_v44  ;;  %687 = vst [vmem:[%s1244_s20 + $0x48] sm:$0xff] (%p1043_p6), %v686_v45 }
  0x45   : > { %v525_v31 = vmax.f32 %v493_v23, 0.0  ;;  %v526_v32 = vmax.f32 %v494_v24, 0.0  ;;  %v527_v33 = vmax.f32 %v495_v26, 0.0  ;;  %v528_v34 = vmax.f32 %v496_v27, 0.0  ;;  %570 = sbr.rel (!%p1043_p6) target bundleno = 85 (0x55), region = 77  ;;  %669 = vst [vmem:[%s1244_s20] sm:$0xff] (%p1043_p6), %v668_v25  ;;  %689 = vst [vmem:[%s1244_s20 + $0x50] sm:$0xff] (%p1043_p6), %v688_v46 }
  0x46   : > { %v529_v35 = vmax.f32 %v497_v16, 0.0  ;;  %v530_v36 = vmax.f32 %v498_v28, 0.0  ;;  %556 = vst.msk [vmem:[%s1113_s11 + $0xc0] sm:$0xff] %vm531_vm0, %v523_v29  ;;  %557 = vst.msk [vmem:[%s1113_s11 + $0xc8] sm:$0xff] %vm531_vm0, %v524_v30  ;;  %v700_v52 = vld [vmem:[%s1113_s11 + $0x80] sm:$0xff] (%p1043_p6)  ;;  %v702_v53 = vld [vmem:[%s1113_s11 + $0x88] sm:$0xff] (%p1043_p6) }
  0x47   : > { %558 = vst.msk [vmem:[%s1113_s11 + $0xd0] sm:$0xff] %vm531_vm0, %v525_v31  ;;  %559 = vst.msk [vmem:[%s1113_s11 + $0xd8] sm:$0xff] %vm531_vm0, %v526_v32  ;;  %v704_v54 = vld [vmem:[%s1113_s11 + $0x90] sm:$0xff] (%p1043_p6)  ;;  %v706_v55 = vld [vmem:[%s1113_s11 + $0x98] sm:$0xff] (%p1043_p6) }
  0x48   : > { %560 = vst.msk [vmem:[%s1113_s11 + $0xe0] sm:$0xff] %vm531_vm0, %v527_v33  ;;  %561 = vst.msk [vmem:[%s1113_s11 + $0xe8] sm:$0xff] %vm531_vm0, %v528_v34  ;;  %v708_v56 = vld [vmem:[%s1113_s11 + $0xa0] sm:$0xff] (%p1043_p6)  ;;  %v710_v57 = vld [vmem:[%s1113_s11 + $0xa8] sm:$0xff] (%p1043_p6) }
  0x49   : > { %562 = vst.msk [vmem:[%s1113_s11 + $0xf0] sm:$0xff] %vm531_vm0, %v529_v35  ;;  %563 = vst.msk [vmem:[%s1113_s11 + $0xf8] sm:$0xff] %vm531_vm0, %v530_v36  ;;  %v712_v58 = vld [vmem:[%s1113_s11 + $0xb0] sm:$0xff] (%p1043_p6)  ;;  %v714_v59 = vld [vmem:[%s1113_s11 + $0xb8] sm:$0xff] (%p1043_p6) }
  0x4a   : > { %691 = vst [vmem:[%s1244_s20 + $0x58] sm:$0xff] %v690_v47  ;;  %693 = vst [vmem:[%s1244_s20 + $0x60] sm:$0xff] %v692_v48 }
  0x4b   : > { %695 = vst [vmem:[%s1244_s20 + $0x68] sm:$0xff] %v694_v49  ;;  %697 = vst [vmem:[%s1244_s20 + $0x70] sm:$0xff] %v696_v50 }
  0x4c   : > { %699 = vst [vmem:[%s1244_s20 + $0x78] sm:$0xff] %v698_v51  ;;  %701 = vst [vmem:[%s1244_s20 + $0x100] sm:$0xff] %v700_v52 }
  0x4d   : > { %703 = vst [vmem:[%s1244_s20 + $0x108] sm:$0xff] %v702_v53  ;;  %705 = vst [vmem:[%s1244_s20 + $0x110] sm:$0xff] %v704_v54  ;;  %v716_v60 = vld [vmem:[%s1113_s11 + $0xc0] sm:$0xff]  ;;  %v718_v61 = vld [vmem:[%s1113_s11 + $0xc8] sm:$0xff] }
  0x4e   : > { %707 = vst [vmem:[%s1244_s20 + $0x118] sm:$0xff] %v706_v55  ;;  %709 = vst [vmem:[%s1244_s20 + $0x120] sm:$0xff] %v708_v56  ;;  %v720_v62 = vld [vmem:[%s1113_s11 + $0xd0] sm:$0xff]  ;;  %v722_v63 = vld [vmem:[%s1113_s11 + $0xd8] sm:$0xff] }
  0x4f   : > { %711 = vst [vmem:[%s1244_s20 + $0x128] sm:$0xff] %v710_v57  ;;  %713 = vst [vmem:[%s1244_s20 + $0x130] sm:$0xff] %v712_v58  ;;  %v724_v0 = vld [vmem:[%s1113_s11 + $0xe0] sm:$0xff]  ;;  %v726_v1 = vld [vmem:[%s1113_s11 + $0xe8] sm:$0xff] }
  0x50   : > { %715 = vst [vmem:[%s1244_s20 + $0x138] sm:$0xff] %v714_v59  ;;  %717 = vst [vmem:[%s1244_s20 + $0x140] sm:$0xff] %v716_v60  ;;  %v728_v2 = vld [vmem:[%s1113_s11 + $0xf0] sm:$0xff]  ;;  %v730_v3 = vld [vmem:[%s1113_s11 + $0xf8] sm:$0xff] }
  0x51   : > { %719 = vst [vmem:[%s1244_s20 + $0x148] sm:$0xff] %v718_v61  ;;  %721 = vst [vmem:[%s1244_s20 + $0x150] sm:$0xff] %v720_v62 }
  0x52   : > { %723 = vst [vmem:[%s1244_s20 + $0x158] sm:$0xff] %v722_v63  ;;  %725 = vst [vmem:[%s1244_s20 + $0x160] sm:$0xff] %v724_v0 }
  0x53   : > { %727 = vst [vmem:[%s1244_s20 + $0x168] sm:$0xff] %v726_v1  ;;  %729 = vst [vmem:[%s1244_s20 + $0x170] sm:$0xff] %v728_v2 }
  0x54   : > { %731 = vst [vmem:[%s1244_s20 + $0x178] sm:$0xff] %v730_v3 }
  0x55 PF: > { %s13_s16 = sadd.s32 1, %s986_s16   ;;  %s1327_s12 = smov %s974_s13 }
  0x56   : > { %p10_p11 = scmp.ge.s32.totalorder %s13_s16, 4   ;;  %s1328_s13 = smov %s1048_s22 }
  0x57   : > { %s1329_s14 = smov %s982_s15  ;;  %s1330_s15 = smov %s1332_s17 }
  0x58   :  { %12 = sbr.rel (!%p10_p11) target bundleno = 3 (0x3), region = 146 }

// kernel: dec_block_forward.2
= control target key start
LH: loop header
LB: loop body
LE: loop exit
PB: predicated region body
PF: predicated region fallthrough
CT: control target
= control target key end

     0   :  { %s4826_s0 = inlined_call_operand.vmem [shape: bf16[2,17,17,8], index: 0, kind: input, shape index: {}, may-alias: {0,1}]   ;;  %s4827_s1 = inlined_call_operand.vmem [shape: bf16[2,17,17,8], index: 1, kind: input, shape index: {}, may-alias: {0,1}]   ;;  %s4828_s2 = inlined_call_operand.vmem [shape: bf16[4,8,64], index: 2, kind: input, shape index: {}]   ;;  %s4829_s3 = inlined_call_operand.vmem [shape: f32[1,64], index: 3, kind: input, shape index: {}]   ;;  %s4830_s4 = inlined_call_operand.vmem [shape: bf16[2,16,16,64], index: 4, kind: output, shape index: {0}]   ;;  %s4831_s5 = inlined_call_operand.vmem [shape: f32[1,2,2,64], index: 5, kind: output, shape index: {1}]  }
   0x1   :  { %4835 = sst [smem:[#allocation18_spill]] %s4826_s0 }
   0x2   :  { %s3819_s18 = smov 0   ;;  %s3821_s19 = smov 0  }
   0x3   :  { %s3823_s20 = smov 0   ;;  %s3825_s21 = smov 0  }
   0x4   :  { %s3827_s22 = smov 0   ;;  %s3829_s23 = smov 0  }
   0x5   :  { %s3831_s24 = smov 0  }
   0x6 LB: > { %s3083_s25 = sadd.s32 4294967295, %s3754_s24   ;;  %s25_s26 = sadd.s32 1, %s3750_s23  ;;  %s3754_s24 = sphi %s3831_s24, %s16_s24   ;;  %s3750_s23 = sphi %s3829_s23, %s4876_s23   ;;  %s3746_s22 = sphi %s3827_s22, %s4875_s22   ;;  %s3742_s21 = sphi %s3825_s21, %s4874_s21   ;;  %s3738_s20 = sphi %s3823_s20, %s4873_s20   ;;  %s3734_s19 = sphi %s3821_s19, %s4872_s19   ;;  %s3730_s18 = sphi %s3819_s18, %s4871_s18  }
   0x7   : > { %p26_p0 = scmp.ge.s32.totalorder %s25_s26, 2  ;;  %s37_s27 = sadd.s32 1, %s3742_s21 }
   0x8   : > { %p44_p1 = scmp.ne.s32.totalorder %s3742_s21, %s3738_s20  ;;  %p45_p2 = scmp.eq.s32.totalorder %s3754_s24, 0 }
   0x9   : > { %s4878_s26 = smov (%p26_p0, %s25_s26), 0  ;;  %s3258_s29 = sshll.u32 %s3750_s23, 3 }
   0xa   : > { %4836 = sst [smem:[#allocation5_spill]] %s4878_s26  ;;  %p3867_p3 = por %p45_p2, %p44_p1 }
   0xb   : > { %s33_s30 = ssub.s32 %s3750_s23, %s4878_s26  ;;  %s3259_s6 = sadd.s32 8, %s3258_s29 }
   0xc   : > { %p35_p4 = scmp.eq.s32.totalorder %s33_s30, 0  ;;  %s3260_s7 = sshll.u32 %s4878_s26, 3 }
   0xd   : > { %s3261_s8 = sadd.s32 8, %s3260_s7  ;;  %s69_s9 = sadd.s32 1, %s3734_s19 }
   0xe   : > { %s3877_s10 = scalar_select %p35_p4, %s3742_s21, %s37_s27  }
   0xf   : > { %s65_s11 = ssub.s32 %s3259_s6, %s3261_s8  ;;  %p76_p5 = scmp.ne.s32.totalorder %s3734_s19, %s3730_s18 }
  0x10   : > { %p67_p6 = scmp.eq.s32.totalorder %s65_s11, 0  ;;  %p150_p7 = scmp.eq.s32.totalorder %s3083_s25, 1 }
  0x11   : > { %p3883_p8 = por %p76_p5, %p45_p2  ;;  %p3088_p10 = scmp.ge.s32.totalorder %s3754_s24, 2 }
  0x12   : > { %s3888_s13 = scalar_select %p67_p6, %s3734_s19, %s69_s9  }
  0x13   : > { %p3893_p9 = por %p150_p7, %p44_p1  ;;  %206 = sbr.rel (%p3088_p10) target bundleno = 116 (0x74), region = 24 }
  0x18   : > { %209 = sbr.rel (!%p3867_p3) target bundleno = 109 (0x6d), region = 28  ;;  %s211_s15 = sand.u32 (%p3867_p3), 1, %s3742_s21  }
  0x19   : > { %s3520_s16 = smul.u32 (%p3867_p3), 192, %s211_s15  ;;  %s4840_s0 = sld [smem:[#allocation18_spill]] (%p3867_p3) }
  0x1a   : > { %s3521_s17 = smul.u32 (%p3867_p3), 96, %s3750_s23  ;;  %s3788_s6 = smov (%p3867_p3), 24  }
  0x1b   : > { %s3907_s30 = scalar_lea.vmem (%p3867_p3), [#allocation2], %s3520_s16   ;;  %3646 = sdivrem.u32 (%p3867_p3), %s3788_s6, 24 }
  0x1f   : > { %s3905_s29 = scalar_lea.vmem %s4840_s0, %s3521_s17  }
  0x24   : > { %s3910_s7 = spop.drf %3646 }
  0x25   : > { %p3096_p11 = scmp.le.s32.totalorder %s3910_s7, 0 }
  0x26   : > { %s4841_s28 = smov (!%p3096_p11), %s3907_s30  ;;  %s4842_s8 = smov (!%p3096_p11), %s3905_s29 }
  0x27   : > { %3016 = sbr.rel (%p3096_p11) target bundleno = 84 (0x54), region = 247  ;;  %s3919_s9 = smov (!%p3096_p11), 0  }
  0x28   : > { %s3921_s11 = smov (!%p3096_p11), 0  }
  0x2c LB: >> { %v248_v0 = vld [vmem:[%s3762_s8] sm:$0xf]  ;;  %v250_v1 = vld [vmem:[%s3762_s8 + $0x4] sm:$0xf]  ;;  %v252_v2 = vld [vmem:[%s3762_s8 + $0x8] sm:$0xf]  ;;  %s3770_s11 = sphi %s3921_s11, %s242_s11   ;;  %s3766_s9 = sphi %s3919_s9, %s4843_s9   ;;  %s3762_s8 = sphi %s4842_s8, %s349_s8   ;;  %s3758_s28 = sphi %s4841_s28, %s350_s28  }
  0x2d   : >> { %249 = vst [vmem:[%s3758_s28] sm:$0xf] %v248_v0  ;;  %251 = vst [vmem:[%s3758_s28 + $0x4] sm:$0xf] %v250_v1  ;;  %v254_v3 = vld [vmem:[%s3762_s8 + $0xc] sm:$0xf]  ;;  %s344_s15 = sadd.s32 1, %s3766_s9 }
  0x2e   : >> { %253 = vst [vmem:[%s3758_s28 + $0x8] sm:$0xf] %v252_v2  ;;  %v256_v4 = vld [vmem:[%s3762_s8 + $0x10] sm:$0xf]  ;;  %v258_v5 = vld [vmem:[%s3762_s8 + $0x14] sm:$0xf]  ;;  %p345_p12 = scmp.ge.s32.totalorder %s344_s15, %s3910_s7 }
  0x2f   : >> { %255 = vst [vmem:[%s3758_s28 + $0xc] sm:$0xf] %v254_v3  ;;  %257 = vst [vmem:[%s3758_s28 + $0x10] sm:$0xf] %v256_v4  ;;  %v260_v6 = vld [vmem:[%s3762_s8 + $0x18] sm:$0xf] }
  0x30   : >> { %259 = vst [vmem:[%s3758_s28 + $0x14] sm:$0xf] %v258_v5  ;;  %v262_v7 = vld [vmem:[%s3762_s8 + $0x1c] sm:$0xf]  ;;  %v264_v8 = vld [vmem:[%s3762_s8 + $0x20] sm:$0xf] }
  0x31   : >> { %261 = vst [vmem:[%s3758_s28 + $0x18] sm:$0xf] %v260_v6  ;;  %263 = vst [vmem:[%s3758_s28 + $0x1c] sm:$0xf] %v262_v7  ;;  %v266_v9 = vld [vmem:[%s3762_s8 + $0x24] sm:$0xf] }
  0x32   : >> { %265 = vst [vmem:[%s3758_s28 + $0x20] sm:$0xf] %v264_v8  ;;  %v268_v10 = vld [vmem:[%s3762_s8 + $0x28] sm:$0xf]  ;;  %v270_v11 = vld [vmem:[%s3762_s8 + $0x2c] sm:$0xf] }
  0x33   : >> { %267 = vst [vmem:[%s3758_s28 + $0x24] sm:$0xf] %v266_v9  ;;  %269 = vst [vmem:[%s3758_s28 + $0x28] sm:$0xf] %v268_v10  ;;  %v272_v12 = vld [vmem:[%s3762_s8 + $0x30] sm:$0xf] }
  0x34   : >> { %271 = vst [vmem:[%s3758_s28 + $0x2c] sm:$0xf] %v270_v11  ;;  %v274_v13 = vld [vmem:[%s3762_s8 + $0x34] sm:$0xf]  ;;  %v276_v14 = vld [vmem:[%s3762_s8 + $0x38] sm:$0xf] }
  0x35   : >> { %273 = vst [vmem:[%s3758_s28 + $0x30] sm:$0xf] %v272_v12  ;;  %275 = vst [vmem:[%s3758_s28 + $0x34] sm:$0xf] %v274_v13  ;;  %v278_v15 = vld [vmem:[%s3762_s8 + $0x3c] sm:$0xf] }
  0x36   : >> { %277 = vst [vmem:[%s3758_s28 + $0x38] sm:$0xf] %v276_v14  ;;  %v280_v16 = vld [vmem:[%s3762_s8 + $0x40] sm:$0xf]  ;;  %v282_v17 = vld [vmem:[%s3762_s8 + $0x44] sm:$0xf] }
  0x37   : >> { %279 = vst [vmem:[%s3758_s28 + $0x3c] sm:$0xf] %v278_v15  ;;  %281 = vst [vmem:[%s3758_s28 + $0x40] sm:$0xf] %v280_v16  ;;  %v284_v18 = vld [vmem:[%s3762_s8 + $0x48] sm:$0xf] }
  0x38   : >> { %283 = vst [vmem:[%s3758_s28 + $0x44] sm:$0xf] %v282_v17  ;;  %v286_v19 = vld [vmem:[%s3762_s8 + $0x4c] sm:$0xf]  ;;  %v288_v20 = vld [vmem:[%s3762_s8 + $0x50] sm:$0xf] }
  0x39   : >> { %285 = vst [vmem:[%s3758_s28 + $0x48] sm:$0xf] %v284_v18  ;;  %287 = vst [vmem:[%s3758_s28 + $0x4c] sm:$0xf] %v286_v19  ;;  %v290_v21 = vld [vmem:[%s3762_s8 + $0x54] sm:$0xf] }
  0x3a   : >> { %289 = vst [vmem:[%s3758_s28 + $0x50] sm:$0xf] %v288_v20  ;;  %v292_v22 = vld [vmem:[%s3762_s8 + $0x58] sm:$0xf]  ;;  %v294_v23 = vld [vmem:[%s3762_s8 + $0x5c] sm:$0xf] }
  0x3b   : >> { %291 = vst [vmem:[%s3758_s28 + $0x54] sm:$0xf] %v290_v21  ;;  %293 = vst [vmem:[%s3758_s28 + $0x58] sm:$0xf] %v292_v22  ;;  %v296_v24 = vld [vmem:[%s3762_s8 + $0xcc] sm:$0xf] }
  0x3c   : >> { %295 = vst [vmem:[%s3758_s28 + $0x5c] sm:$0xf] %v294_v23  ;;  %v298_v25 = vld [vmem:[%s3762_s8 + $0xd0] sm:$0xf]  ;;  %v300_v26 = vld [vmem:[%s3762_s8 + $0xd4] sm:$0xf] }
  0x3d   : >> { %297 = vst [vmem:[%s3758_s28 + $0x60] sm:$0xf] %v296_v24  ;;  %299 = vst [vmem:[%s3758_s28 + $0x64] sm:$0xf] %v298_v25  ;;  %v302_v27 = vld [vmem:[%s3762_s8 + $0xd8] sm:$0xf] }
  0x3e   : >> { %301 = vst [vmem:[%s3758_s28 + $0x68] sm:$0xf] %v300_v26  ;;  %v304_v28 = vld [vmem:[%s3762_s8 + $0xdc] sm:$0xf]  ;;  %v306_v29 = vld [vmem:[%s3762_s8 + $0xe0] sm:$0xf] }
  0x3f   : >> { %303 = vst [vmem:[%s3758_s28 + $0x6c] sm:$0xf] %v302_v27  ;;  %305 = vst [vmem:[%s3758_s28 + $0x70] sm:$0xf] %v304_v28  ;;  %v308_v30 = vld [vmem:[%s3762_s8 + $0xe4] sm:$0xf] }
  0x40   : >> { %307 = vst [vmem:[%s3758_s28 + $0x74] sm:$0xf] %v306_v29  ;;  %v310_v31 = vld [vmem:[%s3762_s8 + $0xe8] sm:$0xf]  ;;  %v312_v32 = vld [vmem:[%s3762_s8 + $0xec] sm:$0xf] }
  0x41   : >> { %309 = vst [vmem:[%s3758_s28 + $0x78] sm:$0xf] %v308_v30  ;;  %311 = vst [vmem:[%s3758_s28 + $0x7c] sm:$0xf] %v310_v31  ;;  %v314_v33 = vld [vmem:[%s3762_s8 + $0xf0] sm:$0xf] }
  0x42   : >> { %313 = vst [vmem:[%s3758_s28 + $0x80] sm:$0xf] %v312_v32  ;;  %v316_v34 = vld [vmem:[%s3762_s8 + $0xf4] sm:$0xf]  ;;  %v318_v35 = vld [vmem:[%s3762_s8 + $0xf8] sm:$0xf] }
  0x43   : >> { %315 = vst [vmem:[%s3758_s28 + $0x84] sm:$0xf] %v314_v33  ;;  %317 = vst [vmem:[%s3758_s28 + $0x88] sm:$0xf] %v316_v34  ;;  %v320_v36 = vld [vmem:[%s3762_s8 + $0xfc] sm:$0xf] }
  0x44   : >> { %319 = vst [vmem:[%s3758_s28 + $0x8c] sm:$0xf] %v318_v35  ;;  %v322_v37 = vld [vmem:[%s3762_s8 + $0x100] sm:$0xf]  ;;  %v324_v38 = vld [vmem:[%s3762_s8 + $0x104] sm:$0xf] }
  0x45   : >> { %321 = vst [vmem:[%s3758_s28 + $0x90] sm:$0xf] %v320_v36  ;;  %323 = vst [vmem:[%s3758_s28 + $0x94] sm:$0xf] %v322_v37  ;;  %v326_v39 = vld [vmem:[%s3762_s8 + $0x108] sm:$0xf] }
  0x46   : >> { %325 = vst [vmem:[%s3758_s28 + $0x98] sm:$0xf] %v324_v38  ;;  %v328_v40 = vld [vmem:[%s3762_s8 + $0x10c] sm:$0xf]  ;;  %v330_v41 = vld [vmem:[%s3762_s8 + $0x110] sm:$0xf] }
  0x47   : >> { %327 = vst [vmem:[%s3758_s28 + $0x9c] sm:$0xf] %v326_v39  ;;  %329 = vst [vmem:[%s3758_s28 + $0xa0] sm:$0xf] %v328_v40  ;;  %v332_v42 = vld [vmem:[%s3762_s8 + $0x114] sm:$0xf] }
  0x48   : >> { %331 = vst [vmem:[%s3758_s28 + $0xa4] sm:$0xf] %v330_v41  ;;  %v334_v43 = vld [vmem:[%s3762_s8 + $0x118] sm:$0xf]  ;;  %v336_v44 = vld [vmem:[%s3762_s8 + $0x11c] sm:$0xf] }
  0x49   : >> { %333 = vst [vmem:[%s3758_s28 + $0xa8] sm:$0xf] %v332_v42  ;;  %335 = vst [vmem:[%s3758_s28 + $0xac] sm:$0xf] %v334_v43  ;;  %v338_v45 = vld [vmem:[%s3762_s8 + $0x120] sm:$0xf] }
  0x4a   : >> { %337 = vst [vmem:[%s3758_s28 + $0xb0] sm:$0xf] %v336_v44  ;;  %v340_v46 = vld [vmem:[%s3762_s8 + $0x124] sm:$0xf]  ;;  %v342_v47 = vld [vmem:[%s3762_s8 + $0x128] sm:$0xf] }
  0x4b   : >> { %339 = vst [vmem:[%s3758_s28 + $0xb4] sm:$0xf] %v338_v45  ;;  %341 = vst [vmem:[%s3758_s28 + $0xb8] sm:$0xf] %v340_v46  ;;  %s4880_s15 = smov (%p345_p12, %s344_s15), 0  ;;  %s242_s11 = sadd.s32 1, %s3770_s11  }
  0x4c   : >> { %343 = vst [vmem:[%s3758_s28 + $0xbc] sm:$0xf] %v342_v47  ;;  %s347_s16 = smul.u32 96, %s4880_s15  ;;  %p241_p13 = scmp.ge.s32.totalorder %s242_s11, %s3910_s7 }
  0x4d   : >> { %s4843_s9 = smov %s4880_s15 }
  0x4e   : >> { %s349_s8 = scalar_lea.vmem %s3905_s29, %s347_s16   ;;  %s350_s28 = scalar_lea.vmem %s3907_s30, %s347_s16 [#allocation2]  }
  0x4f   : > { %244 = sbr.rel (!%p241_p13) target bundleno = 44 (0x2c), region = 253 }
  0x54 PF: > { %3648 = sdivrem.u32 %s3788_s6, 24 }
  0x55   : > { %s3097_s17 = smul.u32 96, %s3910_s7 }
  0x57   : > { %s4048_s25 = scalar_lea.vmem %s3905_s29, %s3097_s17   ;;  %s4051_s27 = scalar_lea.vmem %s3907_s30, %s3097_s17 [#allocation2]  }
  0x5d   : > { %s3649_s16 = spop.drf %3648 }
  0x5e   : > { %p3099_p0 = scmp.le.s32.totalorder %s3649_s16, 0 }
  0x5f   : > { %s3772_s15 = smov (!%p3099_p0), %s4051_s27   ;;  %s3776_s0 = smov (!%p3099_p0), %s4048_s25  }
  0x60   : > { %3030 = sbr.rel (%p3099_p0) target bundleno = 109 (0x6d), region = 258  ;;  %s3780_s11 = smov (!%p3099_p0), 0  }
  0x61   : > { %s3784_s26 = smov (!%p3099_p0), 0  }
  0x65 LB: >> { %v367_v48 = vld [vmem:[%s3778_s0] sm:$0xf]  ;;  %v369_v49 = vld [vmem:[%s3778_s0 + $0xcc] sm:$0xf]  ;;  %s371_s29 = sadd.s32 1, %s3782_s11  ;;  %s361_s26 = sadd.s32 1, %s3786_s26   ;;  %s3786_s26 = sphi %s3784_s26, %s361_s26   ;;  %s3782_s11 = sphi %s3780_s11, %s3781_s11   ;;  %s3778_s0 = sphi %s3776_s0, %s376_s0   ;;  %s3774_s15 = sphi %s3772_s15, %s377_s15  }
  0x66   : >> { %368 = vst [vmem:[%s3774_s15] sm:$0xf] %v367_v48  ;;  %370 = vst [vmem:[%s3774_s15 + $0x60] sm:$0xf] %v369_v49  ;;  %p372_p1 = scmp.ge.s32.totalorder %s371_s29, %s3649_s16  ;;  %p360_p2 = scmp.ge.s32.totalorder %s361_s26, %s3649_s16 }
  0x68   : >> { %s4882_s29 = smov (%p372_p1, %s371_s29), 0  ;;  %363 = sbr.rel (!%p360_p2) target bundleno = 101 (0x65), region = 264 }
  0x69   : >> { %s3100_s30 = sshll.u32 %s4882_s29, 2  ;;  %s3781_s11 = smov %s4882_s29  }
  0x6a   : >> { %s376_s0 = scalar_lea.vmem %s4048_s25, %s3100_s30   ;;  %s377_s15 = scalar_lea.vmem %s4051_s27, %s3100_s30 [#allocation2]  }
  0x6d PF: > { %567 = sbr.rel (!%p3883_p8) target bundleno = 116 (0x74), region = 90  ;;  %s569_s6 = sand.u32 (%p3883_p8), 1, %s3734_s19  }
  0x6e   : > { %s3102_s7 = smul.u32 (%p3883_p8), 96, %s3750_s23 }
  0x6f   : > { %s3522_s28 = smul.u32 (%p3883_p8), 24, %s569_s6 }
  0x70   : > { %s2966_s17 = scalar_lea.vmem (%p3883_p8), %s4827_s1, %s3102_s7 }
  0x71   : > { %v3103_v50 = vld [vmem:[%s2966_s17 + $0x60] sm:$0xff] (%p3883_p8)   ;;  %v3105_v51 = vld [vmem:[%s2966_s17 + $0x68] sm:$0xf] (%p3883_p8)  ;;  %v3106_v52 = vld [vmem:[%s2966_s17 + $0x12c] sm:$0xff] (%p3883_p8)   ;;  %s571_s0 = scalar_lea.vmem (%p3883_p8), [#allocation3], %s3522_s28 }
  0x72   : > { %597 = vst [vmem:[%s571_s0] sm:$0xff] %v3103_v50   ;;  %601 = vst [vmem:[%s571_s0 + $0x8] sm:$0xf] %v3105_v51  ;;  %v3108_v53 = vld [vmem:[%s2966_s17 + $0x134] sm:$0xf] }
  0x73   : > { %603 = vst [vmem:[%s571_s0 + $0xc] sm:$0xff] %v3106_v52   ;;  %607 = vst [vmem:[%s571_s0 + $0x14] sm:$0xf] %v3108_v53 }
  0x74 PF: > { %p3109_p3 = scmp.ge.s32.totalorder %s3754_s24, 1  ;;  %p642_p4 = scmp.lt.s32.totalorder %s3754_s24, 3 }
  0x76   : > { %p643_p5 = pnand %p3109_p3, %p642_p4 }
  0x78   : > { %646 = sbr.rel (%p643_p5) target bundleno = 506 (0x1fa), region = 131 }
  0x7d   : > { %v4069_v54 = vld [vmem:[%s4828_s2] sm:$0xf]  ;;  %vm889_vm0 = vcmask 1043456   ;;  %v4074_v55 = vld [vmem:[%s4828_s2 + $0x4] sm:$0xf]  ;;  %s649_s16 = sand.u32 1, %s3738_s20  }
  0x7e   : > { %3513 = vmatprep.subr.msk.bf16.mxu1 %vm889_vm0, %v4069_v54  ;;  %v4081_v56 = vsel %vm889_vm0, %v4069_v54, 0  ;;  %3512 = vmatprep.subr.msk.bf16.mxu0 %vm889_vm0, %v4074_v55  ;;  %s3523_s15 = smul.u32 192, %s649_s16  ;;  %vm882_vm1 = vcmask 64512   ;;  %v4089_v57 = vsel %vm889_vm0, %v4074_v55, 0  ;;  %vm777_vm2 = vsmask.f32 3328 }
  0x7f   : > { %3375 = vmatpush3.bf16.msra.mxu1 %v4081_v56  ;;  %3369 = vmatpush3.bf16.msra.mxu0 %v4089_v57  ;;  %v4096_v58 = vld [vmem:[%s4828_s2 + $0x8] sm:$0xf]  ;;  %v4101_v59 = vld [vmem:[%s4828_s2 + $0xc] sm:$0xf]  ;;  %vm778_vm3 = vsmask.f32 7440 }
  0x80   : > { %3514 = vmatprep.subr.msk.bf16.mxu0 %vm889_vm0, %v4096_v58  ;;  %v4107_v60 = vsel %vm889_vm0, %v4096_v58, 0  ;;  %3515 = vmatprep.subr.msk.bf16.mxu1 %vm889_vm0, %v4101_v59  ;;  %v4113_v61 = vsel %vm889_vm0, %v4101_v59, 0  ;;  %s656_s7 = sand.u32 1, %s3730_s18   ;;  %s4116_s28 = scalar_lea.vmem [#allocation2], %s3523_s15  ;;  %vm4135_vm4 = vmor %vm777_vm2, %vm778_vm3  ;;  %vm1177_vm5 = vcmask 519168   ;;  %vm1182_vm6 = vcmask 523264  }
  0x81   : > { %v744_v62 = vld [vmem:[%s4116_s28 + $0x54] sm:$0xf]  ;;  %v745_v63 = vld [vmem:[%s4116_s28 + $0x58] sm:$0xf]  ;;  %v746_v10 = vld [vmem:[%s4116_s28 + $0x5c] sm:$0x1] }
  0x82   : > { %v768_v0 = vld [vmem:[%s4116_s28 + $0xb4] sm:$0xf]  ;;  %v781_v1 = vshrl.u32 %v744_v62, 16  ;;  %v784_v2 = vshll.u32 %v744_v62, 16  ;;  %v790_v3 = vshll.u32 %v745_v63, 16  ;;  %v794_v4 = vshrl.u32 %v745_v63, 16 }
  0x83   : > { %v769_v5 = vld [vmem:[%s4116_s28 + $0xb8] sm:$0xf]  ;;  %v4122_v6 = vcombine.low %v744_v62, %v745_v63  ;;  %v805_v7 = vshrl.u32 %v768_v0, 16  ;;  %v808_v8 = vshll.u32 %v768_v0, 16  ;;  %s3524_s18 = smul.u32 24, %s656_s7  ;;  %v800_v23 = vshll.u32 %v746_v10, 16 }
  0x84   : > { %v814_v9 = vshll.u32 %v769_v5, 16  ;;  %v783_v11 = vrot.slane %v781_v1, 4  ;;  %v786_v12 = vrot.slane %v784_v2, 5  ;;  %v792_v13 = vrot.slane %v790_v3, 5  ;;  %v770_v15 = vld [vmem:[%s4116_s28 + $0xbc] sm:$0x1] }
  0x85   : > { %v796_v14 = vrot.slane %v794_v4, 4  ;;  %3376 = vmatprep.mubr.msk.bf16.mxu1 %vm882_vm1, %v4122_v6  ;;  %v807_v16 = vrot.slane %v805_v7, 4  ;;  %v810_v17 = vrot.slane %v808_v8, 5  ;;  %v818_v19 = vshrl.u32 %v769_v5, 16  ;;  %s4130_s8 = scalar_lea.vmem [#allocation3], %s3524_s18  ;;  %s3110_s0 = sshll.u32 %s649_s16, 7 }
  0x86   : > { %v816_v18 = vrot.slane %v814_v9, 5  ;;  %v4128_v20 = vcombine.low %v768_v0, %v769_v5  ;;  %v787_v21 = vor.u32 %v786_v12, %v783_v11  ;;  %v771_v24 = vld [vmem:[%s4130_s8] sm:$0xf]  ;;  %v824_v28 = vshll.u32 %v770_v15, 16  ;;  %v772_v29 = vld [vmem:[%s4130_s8 + $0x4] sm:$0xf] }
  0x87   : > { %v797_v22 = vor.u32 %v796_v14, %v792_v13  ;;  %v820_v25 = vrot.slane %v818_v19, 4  ;;  %v811_v27 = vor.u32 %v810_v17, %v807_v16  ;;  %v829_v30 = vshrl.u32 %v771_v24, 16  ;;  %v773_v34 = vld [vmem:[%s4130_s8 + $0x8] sm:$0x1]  ;;  %v4145_v40 = vld [vmem:[%s4130_s8 + $0xc] sm:$0xf] }
  0x88   : > { %3377 = vmatmul.mubr.msk.bf16.vlgmr.msra.gmra.mxu1 %vm882_vm1, %v4128_v20  ;;  %v788_v31 = vrot.slane %v787_v21, 4  ;;  %v802_v33 = vrot.slane %v800_v23, 5  ;;  %v832_v35 = vshll.u32 %v771_v24, 16  ;;  %v826_v38 = vrot.slane %v824_v28, 5  ;;  %v4152_v45 = vld [vmem:[%s4130_s8 + $0x10] sm:$0xf] }
  0x89   : > { %v798_v32 = vrot.slane %v797_v22, 4  ;;  %v812_v36 = vrot.slane %v811_v27, 4  ;;  %v821_v37 = vor.u32 %v820_v25, %v816_v18  ;;  %3387 = vmatpush3.bf16.msra.mxu1 %v4113_v61  ;;  %v831_v39 = vrot.slane %v829_v30, 4  ;;  %v776_v63 = vld [vmem:[%s4130_s8 + $0x14] sm:$0x1]  ;;  %s4451_s20 = scalar_lea.vmem [#allocation4], %s3110_s0 }
  0x8a   : > { %v793_v41 = vsel %vm4135_vm4, %v788_v31, %v792_v13  ;;  %v834_v43 = vrot.slane %v832_v35, 5  ;;  %v838_v44 = vshll.u32 %v772_v29, 16  ;;  %3517 = vmatprep.subr.msk.bf16.mxu1 %vm889_vm0, %v4069_v54  ;;  %v842_v49 = vshrl.u32 %v772_v29, 16  ;;  %v4171_v7 = vld [vmem:[%s4116_s28] sm:$0xf]  ;;  %p708_p6 = scmp.lt.s32.totalorder %s3746_s22, 1 }
  0x8b   : > { %v803_v42 = vsel %vm4135_vm4, %v798_v32, %v802_v33  ;;  %v817_v47 = vsel %vm4135_vm4, %v812_v36, %v816_v18  ;;  %v822_v48 = vrot.slane %v821_v37, 4  ;;  %v848_v52 = vshll.u32 %v773_v34, 16  ;;  %v724_v12 = vld [vmem:[%s4116_s28 + $0x4] sm:$0xf]  ;;  %v726_v27 = vld [vmem:[%s4116_s28 + $0xc] sm:$0xf] }
  0x8c   : > { %v4156_v46 = vcombine.low %v793_v41, %v803_v42  ;;  %v835_v50 = vor.u32 %v834_v43, %v831_v39  ;;  %v840_v51 = vrot.slane %v838_v44, 5  ;;  %v853_v53 = vshrl.u32 %v4145_v40, 16  ;;  %v727_v32 = vld [vmem:[%s4116_s28 + $0x10] sm:$0xf]  ;;  %s709_s26 = scalar_select %p708_p6, %s3746_s22, 1 }
  0x8d   : > { %v827_v54 = vsel %vm4135_vm4, %v822_v48, %v826_v38  ;;  %v844_v62 = vrot.slane %v842_v49, 4  ;;  %v856_v0 = vshll.u32 %v4145_v40, 16  ;;  %v862_v1 = vshll.u32 %v4152_v45, 16  ;;  %s3295_s15 = sshll.u32 (%p3893_p9), %s3746_s22, 6 }
  0x8e   : > { %3370 = vmatprep.mubr.msk.bf16.mxu0 %vm882_vm1, %v4156_v46  ;;  %v4168_v2 = vcombine.low %v817_v47, %v827_v54  ;;  %v836_v3 = vrot.slane %v835_v50, 4  ;;  %v850_v4 = vrot.slane %v848_v52, 5  ;;  %v855_v5 = vrot.slane %v853_v53, 4  ;;  %s3111_s12 = sshll.u32 %s709_s26, 1  ;;  %s2725_s30 = scalar_lea.vmem (%p3893_p9), %s4830_s4, %s3295_s15 }
  0x8f   : > { %v845_v8 = vor.u32 %v844_v62, %v840_v51  ;;  %v858_v9 = vrot.slane %v856_v0, 5  ;;  %v864_v10 = vrot.slane %v862_v1, 5  ;;  %v866_v11 = vshrl.u32 %v4152_v45, 16  ;;  %s713_s16 = scalar_lea.vmem %s4831_s5, %s3111_s12 }
  0x90   : > { %3371 = vmatmul.mubr.msk.bf16.vlgmr.msra.gmra.mxu0 %vm882_vm1, %v4168_v2  ;;  %v841_v13 = vsel %vm4135_vm4, %v836_v3, %v840_v51  ;;  %v872_v14 = vshll.u32 %v776_v63, 16  ;;  %v3123_v15 = vcombine.low %v771_v24, %v772_v29  ;;  %v3124_v16 = vcombine.low %v4145_v40, %v4152_v45  ;;  %v725_v40 = vld [vmem:[%s4116_s28 + $0x8] sm:$0x1]  ;;  %v728_v45 = vld [vmem:[%s4116_s28 + $0x14] sm:$0x1] }
  0x91   : > { %3381 = vmatpush3.bf16.msra.mxu0 %v4107_v60  ;;  %v846_v17 = vrot.slane %v845_v8, 4  ;;  %v859_v18 = vor.u32 %v858_v9, %v855_v5  ;;  %v868_v19 = vrot.slane %v866_v11, 4  ;;  %v1214_v21 = vshrl.u32 %v4171_v7, 16  ;;  %v729_v51 = vld [vmem:[%s4116_s28 + $0x18] sm:$0xf] }
  0x92   : > { %v874_v22 = vrot.slane %v872_v14, 5  ;;  %3382 = vmatprep.mubr.msk.bf16.mxu0 %vm882_vm1, %v3123_v15  ;;  %3516 = vmatprep.subr.msk.bf16.mxu0 %vm889_vm0, %v4074_v55  ;;  %v1217_v23 = vshll.u32 %v4171_v7, 16  ;;  %v1223_v24 = vshll.u32 %v724_v12, 16  ;;  %v1227_v25 = vshrl.u32 %v724_v12, 16  ;;  %v730_v63 = vld [vmem:[%s4116_s28 + $0x1c] sm:$0xf] }
  0x93   : > { %v851_v28 = vsel %vm4135_vm4, %v846_v17, %v850_v4  ;;  %v860_v29 = vrot.slane %v859_v18, 4  ;;  %v869_v30 = vor.u32 %v868_v19, %v864_v10  ;;  %v1216_v31 = vrot.slane %v1214_v21, 4 }
  0x94   : > { %v3127_v33 = vcombine.low %v841_v13, %v851_v28  ;;  %v1219_v34 = vrot.slane %v1217_v23, 5  ;;  %v1225_v35 = vrot.slane %v1223_v24, 5  ;;  %v1229_v36 = vrot.slane %v1227_v25, 4  ;;  %v732_v13 = vld [vmem:[%s4116_s28 + $0x24] sm:$0xf] }
  0x95   : > { %v865_v55 = vsel %vm4135_vm4, %v860_v29, %v864_v10  ;;  %v870_v37 = vrot.slane %v869_v30, 4  ;;  %v3168_v38 = vcombine.low %v4171_v7, %v724_v12  ;;  %v1238_v39 = vshrl.u32 %v726_v27, 16 }
  0x96   : > { %3388 = vmatprep.mubr.msk.bf16.mxu1 %vm882_vm1, %v3127_v33  ;;  %v1241_v41 = vshll.u32 %v726_v27, 16  ;;  %v1247_v42 = vshll.u32 %v727_v32, 16  ;;  %v1251_v43 = vshrl.u32 %v727_v32, 16  ;;  %v4196_v44 = vcombine.low %v726_v27, %v727_v32  ;;  %v734_v27 = vld [vmem:[%s4116_s28 + $0x2c] sm:$0x1] }
  0x97   : > { %v875_v47 = vsel %vm4135_vm4, %v870_v37, %v874_v22  ;;  %v1240_v48 = vrot.slane %v1238_v39, 4  ;;  %v1220_v49 = vor.u32 %v1219_v34, %v1216_v31  ;;  %v1230_v50 = vor.u32 %v1229_v36, %v1225_v35  ;;  %v735_v32 = vld [vmem:[%s4116_s28 + $0x30] sm:$0xf] }
  0x98   : > { %v3128_v52 = vcombine.low %v865_v55, %v875_v47  ;;  %3383 = vmatmul.mubr.msk.bf16.vlgmr.msra.gmra.mxu0 %vm882_vm1, %v3124_v16  ;;  %v1243_v53 = vrot.slane %v1241_v41, 5  ;;  %v1249_v54 = vrot.slane %v1247_v42, 5  ;;  %v1253_v62 = vrot.slane %v1251_v43, 4  ;;  %v736_v43 = vld [vmem:[%s4116_s28 + $0x34] sm:$0xf] }
  0x99   : > { %3393 = vmatpush3.bf16.msra.mxu0 %v4089_v57  ;;  %v1221_v0 = vrot.slane %v1220_v49, 4  ;;  %v1231_v1 = vrot.slane %v1230_v50, 4  ;;  %v1233_v3 = vshll.u32 %v725_v40, 16  ;;  %v1257_v4 = vshll.u32 %v728_v45, 16 }
  0x9a   : > { %3389 = vmatmul.mubr.msk.bf16.vlgmr.msra.gmra.mxu1 %vm882_vm1, %v3128_v52  ;;  %3518 = vmatprep.subr.msk.bf16.mxu0 %vm889_vm0, %v4096_v58  ;;  %v1244_v5 = vor.u32 %v1243_v53, %v1240_v48  ;;  %v1254_v7 = vor.u32 %v1253_v62, %v1249_v54  ;;  %v1262_v8 = vshrl.u32 %v729_v51, 16  ;;  %v1265_v9 = vshll.u32 %v729_v51, 16 }
  0x9b   : > { %3423 = vmatpush3.bf16.msra.mxu1 %v4081_v56  ;;  %3424 = vmatprep.mubr.msk.bf16.mxu1 %vm882_vm1, %v3168_v38  ;;  %v1226_v57 = vsel %vm4135_vm4, %v1221_v0, %v1225_v35  ;;  %v1235_v10 = vrot.slane %v1233_v3, 5  ;;  %v1259_v11 = vrot.slane %v1257_v4, 5  ;;  %v1271_v12 = vshll.u32 %v730_v63, 16  ;;  %v733_v56 = vld [vmem:[%s4116_s28 + $0x28] sm:$0xf] }
  0x9c   : > { %v1245_v14 = vrot.slane %v1244_v5, 4  ;;  %v1255_v58 = vrot.slane %v1254_v7, 4  ;;  %3519 = vmatprep.subr.msk.bf16.mxu1 %vm889_vm0, %v4101_v59  ;;  %v1264_v15 = vrot.slane %v1262_v8, 4  ;;  %v1267_v16 = vrot.slane %v1265_v9, 5  ;;  %v731_v59 = vld [vmem:[%s4116_s28 + $0x20] sm:$0x1] }
  0x9d   : > { %v1236_v17 = vsel %vm4135_vm4, %v1231_v1, %v1235_v10  ;;  %v1273_v18 = vrot.slane %v1271_v12, 5  ;;  %v1275_v19 = vshrl.u32 %v730_v63, 16  ;;  %v4218_v21 = vcombine.low %v729_v51, %v730_v63  ;;  %v739_v1 = vld [vmem:[%s4116_s28 + $0x40] sm:$0xf]  ;;  %v737_v8 = vld [vmem:[%s4116_s28 + $0x38] sm:$0x1] }
  0x9e   : > { %v3140_v22 = vcombine.low %v1226_v57, %v1236_v17  ;;  %v1250_v23 = vsel %vm4135_vm4, %v1245_v14, %v1249_v54  ;;  %v1260_v24 = vsel %vm4135_vm4, %v1255_v58, %v1259_v11  ;;  %v1286_v25 = vshrl.u32 %v732_v13, 16  ;;  %v738_v54 = vld [vmem:[%s4116_s28 + $0x3c] sm:$0xf]  ;;  %v740_v12 = vld [vmem:[%s4116_s28 + $0x44] sm:$0x1] }
  0x9f   : > { %v4226_v28 = vcombine.low %v1250_v23, %v1260_v24  ;;  %v1277_v29 = vrot.slane %v1275_v19, 4  ;;  %v1289_v30 = vshll.u32 %v732_v13, 16  ;;  %v1295_v31 = vshll.u32 %v733_v56, 16 }
  0xa0   : > { %3394 = vmatprep.mubr.msk.bf16.mxu0 %vm882_vm1, %v3140_v22  ;;  %v1288_v33 = vrot.slane %v1286_v25, 4  ;;  %v1299_v34 = vshrl.u32 %v733_v56, 16  ;;  %v4230_v35 = vcombine.low %v732_v13, %v733_v56  ;;  %v1268_v36 = vor.u32 %v1267_v16, %v1264_v15  ;;  %v741_v16 = vld [vmem:[%s4116_s28 + $0x48] sm:$0xf] }
  0xa1   : > { %3395 = vmatmul.mubr.msk.bf16.vlgmr.msra.gmra.mxu0 %vm882_vm1, %v4226_v28  ;;  %v1291_v55 = vrot.slane %v1289_v30, 5  ;;  %v1297_v37 = vrot.slane %v1295_v31, 5  ;;  %v1278_v38 = vor.u32 %v1277_v29, %v1273_v18  ;;  %v1281_v39 = vshll.u32 %v731_v59, 16  ;;  %v742_v30 = vld [vmem:[%s4116_s28 + $0x4c] sm:$0xf] }
  0xa2   : > { %3425 = vmatmul.mubr.msk.bf16.vlgmr.msra.gmra.mxu1 %vm882_vm1, %v4196_v44  ;;  %3453 = vmatpush3.bf16.msra.mxu0 %v4107_v60  ;;  %v1301_v40 = vrot.slane %v1299_v34, 4  ;;  %v1269_v41 = vrot.slane %v1268_v36, 4  ;;  %v1305_v42 = vshll.u32 %v734_v27, 16  ;;  %v1310_v45 = vshrl.u32 %v735_v32, 16 }
  0xa3   : > { %3483 = vmatpush3.bf16.msra.mxu1 %v4113_v61  ;;  %3428 = vmatprep.mubr.msk.bf16.mxu1 %vm882_vm1, %v4218_v21  ;;  %v1279_v47 = vrot.slane %v1278_v38, 4  ;;  %v1283_v48 = vrot.slane %v1281_v39, 5  ;;  %v1292_v49 = vor.u32 %v1291_v55, %v1288_v33  ;;  %v1313_v50 = vshll.u32 %v735_v32, 16 }
  0xa4   : > { %v1274_v60 = vsel %vm4135_vm4, %v1269_v41, %v1273_v18  ;;  %v1302_v51 = vor.u32 %v1301_v40, %v1297_v37  ;;  %v1307_v52 = vrot.slane %v1305_v42, 5  ;;  %v1312_v53 = vrot.slane %v1310_v45, 4  ;;  %v4272_v40 = vld [vmem:[%s4116_s28 + $0x60] sm:$0xf] }
  0xa5   : > { %v1284_v62 = vsel %vm4135_vm4, %v1279_v47, %v1283_v48  ;;  %v1293_v61 = vrot.slane %v1292_v49, 4  ;;  %v1315_v63 = vrot.slane %v1313_v50, 5  ;;  %v1319_v0 = vshll.u32 %v736_v43, 16  ;;  %v748_v47 = vld [vmem:[%s4116_s28 + $0x64] sm:$0xf] }
  0xa6   : > { %v4247_v3 = vcombine.low %v1274_v60, %v1284_v62  ;;  %v1303_v4 = vrot.slane %v1302_v51, 4  ;;  %v1323_v5 = vshrl.u32 %v736_v43, 16  ;;  %v4249_v7 = vcombine.low %v735_v32, %v736_v43  ;;  %v743_v62 = vld [vmem:[%s4116_s28 + $0x50] sm:$0x1] }
  0xa7   : > { %v1298_v9 = vsel %vm4135_vm4, %v1293_v61, %v1297_v37  ;;  %v1321_v57 = vrot.slane %v1319_v0, 5  ;;  %v1334_v10 = vshrl.u32 %v738_v54, 16  ;;  %v1337_v11 = vshll.u32 %v738_v54, 16  ;;  %v749_v61 = vld [vmem:[%s4116_s28 + $0x68] sm:$0x1] }
  0xa8   : > { %3398 = vmatprep.mubr.msk.bf16.mxu0 %vm882_vm1, %v4247_v3  ;;  %v1308_v13 = vsel %vm4135_vm4, %v1303_v4, %v1307_v52  ;;  %v1325_v14 = vrot.slane %v1323_v5, 4  ;;  %v1343_v58 = vshll.u32 %v739_v1, 16  ;;  %v1347_v15 = vshrl.u32 %v739_v1, 16  ;;  %v750_v5 = vld [vmem:[%s4116_s28 + $0x6c] sm:$0xf] }
  0xa9   : > { %v4260_v56 = vcombine.low %v1298_v9, %v1308_v13  ;;  %v1336_v17 = vrot.slane %v1334_v10, 4  ;;  %v1339_v18 = vrot.slane %v1337_v11, 5  ;;  %v4262_v19 = vcombine.low %v738_v54, %v739_v1 }
  0xaa   : > { %3429 = vmatmul.mubr.msk.bf16.gmra.mxu1 %vm882_vm1, %v4230_v35  ;;  %v1345_v22 = vrot.slane %v1343_v58, 5  ;;  %v1349_v23 = vrot.slane %v1347_v15, 4  ;;  %v1316_v24 = vor.u32 %v1315_v63, %v1312_v53  ;;  %v1326_v25 = vor.u32 %v1325_v14, %v1321_v57 }
  0xab   : > { %3399 = vmatmul.mubr.msk.bf16.gmra.mxu0 %vm882_vm1, %v4260_v56  ;;  %3432 = vmatprep.mubr.msk.bf16.mxu1 %vm882_vm1, %v4249_v7  ;;  %v1329_v59 = vshll.u32 %v737_v8, 16  ;;  %v1340_v27 = vor.u32 %v1339_v18, %v1336_v17  ;;  %v1353_v29 = vshll.u32 %v740_v12, 16  ;;  %v1358_v31 = vshrl.u32 %v741_v16, 16  ;;  %v751_v17 = vld [vmem:[%s4116_s28 + $0x70] sm:$0xf] }
  0xac   : > { %v1317_v32 = vrot.slane %v1316_v24, 4  ;;  %v1327_v33 = vrot.slane %v1326_v25, 4  ;;  %v1350_v34 = vor.u32 %v1349_v23, %v1345_v22  ;;  %v1361_v36 = vshll.u32 %v741_v16, 16 }
  0xad   : > { %v1331_v55 = vrot.slane %v1329_v59, 5  ;;  %v1341_v37 = vrot.slane %v1340_v27, 4  ;;  %v1355_v38 = vrot.slane %v1353_v29, 5  ;;  %v1360_v39 = vrot.slane %v1358_v31, 4  ;;  %v753_v31 = vld [vmem:[%s4116_s28 + $0x78] sm:$0xf] }
  0xae   : > { %v1322_v41 = vsel %vm4135_vm4, %v1317_v32, %v1321_v57  ;;  %v1351_v42 = vrot.slane %v1350_v34, 4  ;;  %v1363_v43 = vrot.slane %v1361_v36, 5  ;;  %v1367_v45 = vshll.u32 %v742_v30, 16 }
  0xaf   : > { %v1332_v48 = vsel %vm4135_vm4, %v1327_v33, %v1331_v55  ;;  %v1346_v49 = vsel %vm4135_vm4, %v1341_v37, %v1345_v22  ;;  %v1371_v50 = vshrl.u32 %v742_v30, 16  ;;  %v4281_v60 = vcombine.low %v741_v16, %v742_v30  ;;  %v754_v55 = vld [vmem:[%s4116_s28 + $0x7c] sm:$0xf] }
  0xb0   : > { %v4283_v51 = vcombine.low %v1322_v41, %v1332_v48  ;;  %v1356_v52 = vsel %vm4135_vm4, %v1351_v42, %v1355_v38  ;;  %v1369_v53 = vrot.slane %v1367_v45, 5  ;;  %v1382_v54 = vshrl.u32 %v4272_v40, 16  ;;  %v752_v41 = vld [vmem:[%s4116_s28 + $0x74] sm:$0x1]  ;;  %v755_v48 = vld [vmem:[%s4116_s28 + $0x80] sm:$0x1] }
  0xb1   : > { %v4290_v63 = vcombine.low %v1346_v49, %v1356_v52  ;;  %v1373_v0 = vrot.slane %v1371_v50, 4  ;;  %v1385_v1 = vshll.u32 %v4272_v40, 16  ;;  %v1391_v4 = vshll.u32 %v748_v47, 16 }
  0xb2   : > { %3433 = vmatmul.mubr.msk.bf16.gmra.mxu1 %vm882_vm1, %v4262_v19  ;;  %3402 = vmatprep.mubr.msk.bf16.mxu0 %vm882_vm1, %v4283_v51  ;;  %v1384_v8 = vrot.slane %v1382_v54, 4  ;;  %v1395_v9 = vshrl.u32 %v748_v47, 16  ;;  %v3175_v57 = vcombine.low %v4272_v40, %v748_v47  ;;  %v1364_v10 = vor.u32 %v1363_v43, %v1360_v39  ;;  %v756_v54 = vld [vmem:[%s4116_s28 + $0x84] sm:$0xf] }
  0xb3   : > { %3403 = vmatmul.mubr.msk.bf16.gmra.mxu0 %vm882_vm1, %v4290_v63  ;;  %3436 = vmatprep.mubr.msk.bf16.mxu1 %vm882_vm1, %v4281_v60  ;;  %v1387_v11 = vrot.slane %v1385_v1, 5  ;;  %v1393_v12 = vrot.slane %v1391_v4, 5  ;;  %v1374_v13 = vor.u32 %v1373_v0, %v1369_v53  ;;  %v1377_v14 = vshll.u32 %v743_v62, 16 }
  0xb4   : > { %v1397_v58 = vrot.slane %v1395_v9, 4  ;;  %v1365_v15 = vrot.slane %v1364_v10, 4  ;;  %v1401_v16 = vshll.u32 %v749_v61, 16  ;;  %v1406_v18 = vshrl.u32 %v750_v5, 16 }
  0xb5   : > { %v1375_v22 = vrot.slane %v1374_v13, 4  ;;  %v1379_v23 = vrot.slane %v1377_v14, 5  ;;  %v1388_v24 = vor.u32 %v1387_v11, %v1384_v8  ;;  %v1409_v25 = vshll.u32 %v750_v5, 16 }
  0xb6   : > { %v1370_v59 = vsel %vm4135_vm4, %v1365_v15, %v1369_v53  ;;  %v1398_v27 = vor.u32 %v1397_v58, %v1393_v12  ;;  %v1403_v29 = vrot.slane %v1401_v16, 5  ;;  %v1408_v30 = vrot.slane %v1406_v18, 4 }
  0xb7   : > { %v1380_v32 = vsel %vm4135_vm4, %v1375_v22, %v1379_v23  ;;  %v1389_v33 = vrot.slane %v1388_v24, 4  ;;  %v1411_v34 = vrot.slane %v1409_v25, 5  ;;  %v1415_v36 = vshll.u32 %v751_v17, 16  ;;  %v759_v24 = vld [vmem:[%s4116_s28 + $0x90] sm:$0xf] }
  0xb8   : > { %v4310_v37 = vcombine.low %v1370_v59, %v1380_v32  ;;  %v1399_v38 = vrot.slane %v1398_v27, 4  ;;  %v1419_v39 = vshrl.u32 %v751_v17, 16  ;;  %v4312_v40 = vcombine.low %v750_v5, %v751_v17 }
  0xb9   : > { %v1394_v42 = vsel %vm4135_vm4, %v1389_v33, %v1393_v12  ;;  %v1417_v43 = vrot.slane %v1415_v36, 5  ;;  %v1430_v45 = vshrl.u32 %v753_v31, 16  ;;  %v1433_v47 = vshll.u32 %v753_v31, 16  ;;  %v757_v12 = vld [vmem:[%s4116_s28 + $0x88] sm:$0xf] }
  0xba   : > { %3437 = vmatmul.mubr.msk.bf16.gmra.mxu1 %vm882_vm1, %v3175_v57  ;;  %3406 = vmatprep.mubr.msk.bf16.mxu0 %vm882_vm1, %v4310_v37  ;;  %v1404_v49 = vsel %vm4135_vm4, %v1399_v38, %v1403_v29  ;;  %v1421_v50 = vrot.slane %v1419_v39, 4  ;;  %v1439_v52 = vshll.u32 %v754_v55, 16  ;;  %v1443_v53 = vshrl.u32 %v754_v55, 16 }
  0xbb   : > { %v3147_v62 = vcombine.low %v1394_v42, %v1404_v49  ;;  %3440 = vmatprep.mubr.msk.bf16.mxu1 %vm882_vm1, %v4312_v40  ;;  %v1432_v61 = vrot.slane %v1430_v45, 4  ;;  %v1435_v0 = vrot.slane %v1433_v47, 5  ;;  %v4326_v1 = vcombine.low %v753_v31, %v754_v55  ;;  %v761_v42 = vld [vmem:[%s4116_s28 + $0x98] sm:$0x1]  ;;  %v762_v49 = vld [vmem:[%s4116_s28 + $0x9c] sm:$0xf] }
  0xbc   : > { %v1441_v4 = vrot.slane %v1439_v52, 5  ;;  %v1445_v5 = vrot.slane %v1443_v53, 4  ;;  %v1412_v8 = vor.u32 %v1411_v34, %v1408_v30  ;;  %v1422_v9 = vor.u32 %v1421_v50, %v1417_v43  ;;  %v760_v30 = vld [vmem:[%s4116_s28 + $0x94] sm:$0xf] }
  0xbd   : > { %3407 = vmatmul.mubr.msk.bf16.gmra.mxu0 %vm882_vm1, %v3147_v62  ;;  %v1425_v57 = vshll.u32 %v752_v41, 16  ;;  %v1436_v10 = vor.u32 %v1435_v0, %v1432_v61  ;;  %v1449_v11 = vshll.u32 %v755_v48, 16  ;;  %v1454_v13 = vshrl.u32 %v756_v54, 16  ;;  %v758_v41 = vld [vmem:[%s4116_s28 + $0x8c] sm:$0x1] }
  0xbe   : > { %v1413_v14 = vrot.slane %v1412_v8, 4  ;;  %v1423_v58 = vrot.slane %v1422_v9, 4  ;;  %v1446_v15 = vor.u32 %v1445_v5, %v1441_v4  ;;  %v1457_v16 = vshll.u32 %v756_v54, 16 }
  0xbf   : > { %v1427_v17 = vrot.slane %v1425_v57, 5  ;;  %v1437_v18 = vrot.slane %v1436_v10, 4  ;;  %v1451_v22 = vrot.slane %v1449_v11, 5  ;;  %v1456_v23 = vrot.slane %v1454_v13, 4  ;;  %v763_v57 = vld [vmem:[%s4116_s28 + $0xa0] sm:$0xf] }
  0xc0   : > { %v1418_v25 = vsel %vm4135_vm4, %v1413_v14, %v1417_v43  ;;  %v1447_v59 = vrot.slane %v1446_v15, 4  ;;  %v1459_v27 = vrot.slane %v1457_v16, 5  ;;  %v1463_v29 = vshll.u32 %v757_v12, 16 }
  0xc1   : > { %v1428_v31 = vsel %vm4135_vm4, %v1423_v58, %v1427_v17  ;;  %v1442_v32 = vsel %vm4135_vm4, %v1437_v18, %v1441_v4  ;;  %v1467_v33 = vshrl.u32 %v757_v12, 16  ;;  %v4338_v34 = vcombine.low %v756_v54, %v757_v12  ;;  %v765_v18 = vld [vmem:[%s4116_s28 + $0xa8] sm:$0xf] }
  0xc2   : > { %3441 = vmatmul.mubr.msk.bf16.gmra.mxu1 %vm882_vm1, %v4326_v1  ;;  %v4342_v36 = vcombine.low %v1418_v25, %v1428_v31  ;;  %v1452_v55 = vsel %vm4135_vm4, %v1447_v59, %v1451_v22  ;;  %v1465_v38 = vrot.slane %v1463_v29, 5  ;;  %v1478_v39 = vshrl.u32 %v759_v24, 16  ;;  %v766_v59 = vld [vmem:[%s4116_s28 + $0xac] sm:$0xf] }
  0xc3   : > { %v4348_v43 = vcombine.low %v1442_v32, %v1452_v55  ;;  %v1469_v45 = vrot.slane %v1467_v33, 4  ;;  %3444 = vmatprep.mubr.msk.bf16.mxu1 %vm882_vm1, %v4338_v34  ;;  %v1481_v47 = vshll.u32 %v759_v24, 16  ;;  %v1487_v48 = vshll.u32 %v760_v30, 16 }
  0xc4   : > { %3410 = vmatprep.mubr.msk.bf16.mxu0 %vm882_vm1, %v4342_v36  ;;  %v1480_v50 = vrot.slane %v1478_v39, 4  ;;  %v1491_v52 = vshrl.u32 %v760_v30, 16  ;;  %v4355_v53 = vcombine.low %v759_v24, %v760_v30  ;;  %v1460_v54 = vor.u32 %v1459_v27, %v1456_v23  ;;  %v764_v39 = vld [vmem:[%s4116_s28 + $0xa4] sm:$0x1] }
  0xc5   : > { %3411 = vmatmul.mubr.msk.bf16.gmra.mxu0 %vm882_vm1, %v4348_v43  ;;  %v1483_v62 = vrot.slane %v1481_v47, 5  ;;  %v1489_v61 = vrot.slane %v1487_v48, 5  ;;  %v1470_v0 = vor.u32 %v1469_v45, %v1465_v38  ;;  %v1473_v4 = vshll.u32 %v758_v41, 16  ;;  %v767_v48 = vld [vmem:[%s4116_s28 + $0xb0] sm:$0x1] }
  0xc6   : > { %v1493_v5 = vrot.slane %v1491_v52, 4  ;;  %v1461_v8 = vrot.slane %v1460_v54, 4  ;;  %v1497_v9 = vshll.u32 %v761_v42, 16  ;;  %v1502_v10 = vshrl.u32 %v762_v49, 16 }
  0xc7   : > { %v1471_v11 = vrot.slane %v1470_v0, 4  ;;  %v1475_v12 = vrot.slane %v1473_v4, 5  ;;  %v1484_v13 = vor.u32 %v1483_v62, %v1480_v50  ;;  %v1505_v14 = vshll.u32 %v762_v49, 16 }
  0xc8   : > { %v1466_v58 = vsel %vm4135_vm4, %v1461_v8, %v1465_v38  ;;  %v1494_v15 = vor.u32 %v1493_v5, %v1489_v61  ;;  %v1499_v16 = vrot.slane %v1497_v9, 5  ;;  %v1504_v17 = vrot.slane %v1502_v10, 4 }
  0xc9   : > { %v1476_v22 = vsel %vm4135_vm4, %v1471_v11, %v1475_v12  ;;  %v1485_v23 = vrot.slane %v1484_v13, 4  ;;  %v1507_v24 = vrot.slane %v1505_v14, 5  ;;  %v1511_v25 = vshll.u32 %v763_v57, 16 }
  0xca   : > { %3445 = vmatmul.mubr.msk.bf16.gmra.mxu1 %vm882_vm1, %v4355_v53  ;;  %v3150_v27 = vcombine.low %v1466_v58, %v1476_v22  ;;  %v1495_v29 = vrot.slane %v1494_v15, 4  ;;  %v1515_v30 = vshrl.u32 %v763_v57, 16  ;;  %v4368_v31 = vcombine.low %v762_v49, %v763_v57 }
  0xcb   : > { %v1490_v32 = vsel %vm4135_vm4, %v1485_v23, %v1489_v61  ;;  %v1513_v33 = vrot.slane %v1511_v25, 5  ;;  %v1526_v55 = vshrl.u32 %v765_v18, 16  ;;  %v1529_v38 = vshll.u32 %v765_v18, 16 }
  0xcc   : > { %3414 = vmatprep.mubr.msk.bf16.mxu0 %vm882_vm1, %v3150_v27  ;;  %v1500_v41 = vsel %vm4135_vm4, %v1495_v29, %v1499_v16  ;;  %v1517_v42 = vrot.slane %v1515_v30, 4  ;;  %3448 = vmatprep.mubr.msk.bf16.mxu1 %vm882_vm1, %v4368_v31  ;;  %v1535_v45 = vshll.u32 %v766_v59, 16  ;;  %v1539_v47 = vshrl.u32 %v766_v59, 16 }
  0xcd   : > { %v3151_v49 = vcombine.low %v1490_v32, %v1500_v41  ;;  %v1528_v50 = vrot.slane %v1526_v55, 4  ;;  %v1531_v52 = vrot.slane %v1529_v38, 5  ;;  %v3181_v54 = vcombine.low %v765_v18, %v766_v59 }
  0xce   : > { %v1537_v62 = vrot.slane %v1535_v45, 5  ;;  %v1541_v61 = vrot.slane %v1539_v47, 4  ;;  %v1508_v0 = vor.u32 %v1507_v24, %v1504_v17  ;;  %v1518_v4 = vor.u32 %v1517_v42, %v1513_v33 }
  0xcf   : > { %3415 = vmatmul.mubr.msk.bf16.gmra.mxu0 %vm882_vm1, %v3151_v49  ;;  %v1521_v5 = vshll.u32 %v764_v39, 16  ;;  %v1532_v8 = vor.u32 %v1531_v52, %v1528_v50  ;;  %v1545_v9 = vshll.u32 %v767_v48, 16  ;;  %vm2701_vm7 = vcmask 516096  }
  0xd0   : > { %v1509_v57 = vrot.slane %v1508_v0, 4  ;;  %v1519_v10 = vrot.slane %v1518_v4, 4  ;;  %v1542_v11 = vor.u32 %v1541_v61, %v1537_v62 }
  0xd1   : > { %v1523_v12 = vrot.slane %v1521_v5, 5  ;;  %v1533_v13 = vrot.slane %v1532_v8, 4  ;;  %v1547_v14 = vrot.slane %v1545_v9, 5 }
  0xd2   : > { %3449 = vmatmul.mubr.msk.bf16.gmra.mxu1 %vm882_vm1, %v3181_v54  ;;  %v1514_v58 = vsel %vm4135_vm4, %v1509_v57, %v1513_v33  ;;  %v1543_v15 = vrot.slane %v1542_v11, 4 }
  0xd3   : > { %v1524_v16 = vsel %vm4135_vm4, %v1519_v10, %v1523_v12  ;;  %v1538_v17 = vsel %vm4135_vm4, %v1533_v13, %v1537_v62  ;;  %3484 = vmatprep.mubr.msk.bf16.mxu1 %vm882_vm1, %v4226_v28 }
  0xd4   : > { %v3152_v18 = vcombine.low %v1514_v58, %v1524_v16  ;;  %v1548_v22 = vsel %vm4135_vm4, %v1543_v15, %v1547_v14 }
  0xd5   : > { %v3153_v23 = vcombine.low %v1538_v17, %v1548_v22 }
  0xd6   : > { %3418 = vmatprep.mubr.msk.bf16.mxu0 %vm882_vm1, %v3152_v18 }
  0xd7   : > { %3419 = vmatmul.mubr.msk.bf16.gmra.mxu0 %vm882_vm1, %v3153_v23 }
  0xd8   : > { %3454 = vmatprep.mubr.msk.bf16.mxu0 %vm882_vm1, %v4196_v44 }
  0xda   : > { %3485 = vmatmul.mubr.msk.bf16.vlgmr.msra.gmra.mxu1 %vm882_vm1, %v4247_v3 }
  0xdb   : > { %3488 = vmatprep.mubr.msk.bf16.mxu1 %vm882_vm1, %v4260_v56 }
  0xdf   : > { %3455 = vmatmul.mubr.msk.bf16.vlgmr.msra.gmra.mxu0 %vm882_vm1, %v4218_v21 }
  0xe0   : > { %3458 = vmatprep.mubr.msk.bf16.mxu0 %vm882_vm1, %v4230_v35 }
  0xe2   : > { %3489 = vmatmul.mubr.msk.bf16.gmra.mxu1 %vm882_vm1, %v4283_v51 }
  0xe3   : > { %3492 = vmatprep.mubr.msk.bf16.mxu1 %vm882_vm1, %v4290_v63 }
  0xe7   : > { %3459 = vmatmul.mubr.msk.bf16.gmra.mxu0 %vm882_vm1, %v4249_v7 }
  0xe8   : > { %3462 = vmatprep.mubr.msk.bf16.mxu0 %vm882_vm1, %v4262_v19 }
  0xea   : > { %3493 = vmatmul.mubr.msk.bf16.gmra.mxu1 %vm882_vm1, %v4310_v37 }
  0xeb   : > { %3496 = vmatprep.mubr.msk.bf16.mxu1 %vm882_vm1, %v4156_v46 }
  0xef   : > { %3463 = vmatmul.mubr.msk.bf16.gmra.mxu0 %vm882_vm1, %v4281_v60 }
  0xf0   : > { %3466 = vmatprep.mubr.msk.bf16.mxu0 %vm882_vm1, %v4122_v6 }
  0xf2   : > { %3497 = vmatmul.mubr.msk.bf16.gmra.mxu1 %vm882_vm1, %v4342_v36 }
  0xf3   : > { %3500 = vmatprep.mubr.msk.bf16.mxu1 %vm882_vm1, %v4348_v43 }
  0xf7   : > { %3467 = vmatmul.mubr.msk.bf16.gmra.mxu0 %vm882_vm1, %v4312_v40 }
  0xf8   : > { %3470 = vmatprep.mubr.msk.bf16.mxu0 %vm882_vm1, %v4326_v1 }
  0xfa   : > { %3501 = vmatmul.mubr.msk.bf16.gmra.mxu1 %vm882_vm1, %v3150_v27 }
  0xfb   : > { %3504 = vmatprep.mubr.msk.bf16.mxu1 %vm882_vm1, %v3151_v49 }
  0xff   : > { %3471 = vmatmul.mubr.msk.bf16.gmra.mxu0 %vm882_vm1, %v4338_v34 }
 0x100   : > { %3474 = vmatprep.mubr.msk.bf16.mxu0 %vm882_vm1, %v4355_v53 }
 0x102   : > { %3505 = vmatmul.mubr.msk.bf16.gmra.mxu1 %vm882_vm1, %v3152_v18 }
 0x103   : > { %3508 = vmatprep.mubr.msk.bf16.mxu1 %vm882_vm1, %v3153_v23 }
 0x107   : > { %3475 = vmatmul.mubr.msk.bf16.gmra.mxu0 %vm882_vm1, %v4368_v31 }
 0x108   : > { %3478 = vmatprep.mubr.msk.bf16.mxu0 %vm882_vm1, %v3181_v54 }
 0x10a   : > { %3509 = vmatmul.mubr.msk.bf16.gmra.mxu1 %vm882_vm1, %v4168_v2  ;;  %v4445_v2 = vld [vmem:[%s4829_s3] ss:$0 sm:$0xff] }
 0x10f   : > { %3479 = vmatmul.mubr.msk.bf16.gmra.mxu0 %vm882_vm1, %v4128_v20 }
 0x148   : > { %v3378_v6 = vpop.f32.mrf.mxu1 }
 0x14a   : > { %v995_v26 = vpop.f32.mrf.mxu1 }
 0x14c   : > { %v3379_v44 = vpop.f32.mrf.mxu1 }
 0x14e   : > { %v998_v35 = vpop.f32.mrf.mxu1 }
 0x150   : > { %v3372_v46 = vpop.f32.mrf.mxu0 }
 0x151   : > { %v1004_v7 = vadd.f32 %v3378_v6, %v3372_v46 }
 0x152   : > { %v927_v21 = vpop.f32.mrf.mxu0 }
 0x153   : > { %v996_v19 = vadd.f32 %v995_v26, %v927_v21 }
 0x154   : > { %v3373_v28 = vpop.f32.mrf.mxu0 }
 0x155   : > { %v1007_v63 = vadd.f32 %v3379_v44, %v3373_v28 }
 0x156   : > { %v930_v3 = vpop.f32.mrf.mxu0 }
 0x157   : > { %v999_v24 = vadd.f32 %v998_v35, %v930_v3 }
 0x158   : > { %v3384_v56 = vpop.f32.mrf.mxu0 }
 0x159   : > { %v1080_v60 = vadd.f32 %v3384_v56, %v1004_v7 }
 0x15a   : > { %v3390_v51 = vpop.f32.mrf.mxu1  ;;  %v1063_v20 = vpop.f32.mrf.mxu0 }
 0x15b   : > { %v1148_v37 = vadd.f32 %v3390_v51, %v1080_v60  ;;  %v1078_v40 = vadd.f32 %v1063_v20, %v996_v19 }
 0x15c   : > { %v1131_v1 = vpop.f32.mrf.mxu1  ;;  %v3385_v34 = vpop.f32.mrf.mxu0 }
 0x15d   : > { %v1158_v36 = vadd.f32 %v4445_v2, %v1148_v37  ;;  %v1146_v43 = vadd.f32 %v1131_v1, %v1078_v40  ;;  %v1081_v53 = vadd.f32 %v3385_v34, %v1007_v63 }
 0x15e   : > { %v3391_v25 = vpop.f32.mrf.mxu1  ;;  %v1066_v59 = vpop.f32.mrf.mxu0 }
 0x15f   : > { %v3264_v27 = vpack.c.bf16 %v1158_v36, %v1158_v36  ;;  %v1156_v29 = vadd.f32 %v4445_v2, %v1146_v43  ;;  %v1149_v31 = vadd.f32 %v3391_v25, %v1081_v53  ;;  %v1079_v32 = vadd.f32 %v1066_v59, %v999_v24 }
 0x160   : > { %v1134_v30 = vpop.f32.mrf.mxu1  ;;  %v1198_v50 = vmul.f32 %v1158_v36, %v1158_v36  ;;  %v1186_v9 = vsel %vm1182_vm6, %v1158_v36, 0.0 }
 0x161   : > { %3138 = vst.msk [vmem:[%s4451_s20 + $0x78] sm:$0xf] %vm1177_vm5, %v3264_v27  ;;  %v3262_v33 = vpack.c.bf16 %v1156_v29, %v1156_v29  ;;  %v4455_v55 = vpop.f32.mrf.mxu0  ;;  %v1159_v38 = vadd.f32 %v4445_v2, %v1149_v31  ;;  %v1147_v41 = vadd.f32 %v1134_v30, %v1079_v32  ;;  %v1196_v45 = vmul.f32 %v1156_v29, %v1156_v29 }
 0x162   : > { %v4458_v39 = vpop.f32.mrf.mxu1  ;;  %v1183_v54 = vsel %vm1182_vm6, %v1156_v29, 0.0  ;;  %v1203_v58 = vsel %vm1182_vm6, %v1198_v50, 0.0 }
 0x163   : > { %3136 = vst.msk [vmem:[%s4451_s20 + $0x38] sm:$0xf] %vm1177_vm5, %v3262_v33  ;;  %v4462_v42 = vpop.f32.mrf.mxu0  ;;  %v3265_v47 = vpack.c.bf16 %v1159_v38, %v1159_v38  ;;  %v1157_v48 = vadd.f32 %v4445_v2, %v1147_v41  ;;  %v1200_v57 = vsel %vm1182_vm6, %v1196_v45, 0.0  ;;  %v1199_v10 = vmul.f32 %v1159_v38, %v1159_v38 }
 0x164   : > { %v4465_v49 = vpop.f32.mrf.mxu1  ;;  %v1188_v15 = vsel %vm1182_vm6, %v1159_v38, 0.0 }
 0x165   : > { %v4467_v52 = vpop.f32.mrf.mxu0  ;;  %3139 = vst.msk [vmem:[%s4451_s20 + $0x7c] sm:$0xf] %vm1177_vm5, %v3265_v47  ;;  %v3263_v62 = vpack.c.bf16 %v1157_v48, %v1157_v48  ;;  %v1184_v61 = vsel %vm1182_vm6, %v1157_v48, 0.0  ;;  %v1197_v0 = vmul.f32 %v1157_v48, %v1157_v48  ;;  %v1205_v23 = vsel %vm1182_vm6, %v1199_v10, 0.0 }
 0x166   : > { %v4473_v4 = vpop.f32.mrf.mxu1  ;;  %v1185_v5 = vadd.f32 %v1184_v61, %v1183_v54 }
 0x167   : > { %v4475_v8 = vpop.f32.mrf.mxu0  ;;  %3137 = vst.msk [vmem:[%s4451_s20 + $0x3c] sm:$0xf] %vm1177_vm5, %v3263_v62  ;;  %v1201_v11 = vsel %vm1182_vm6, %v1197_v0, 0.0 }
 0x168   : > { %v4482_v12 = vpop.f32.mrf.mxu1  ;;  %v1187_v13 = vadd.f32 %v1186_v9, %v1185_v5  ;;  %v1202_v14 = vadd.f32 %v1201_v11, %v1200_v57 }
 0x16a   : > { %v4486_v16 = vpop.f32.mrf.mxu1  ;;  %v4488_v17 = vadd.f32 %v1188_v15, %v1187_v13  ;;  %v1204_v18 = vadd.f32 %v1203_v58, %v1202_v14  ;;  %v1933_v15 = vadd.f32 %v4458_v39, %v4455_v55 }
 0x16b   : > { %v4490_v22 = vpop.f32.mrf.mxu0 }
 0x16c   : > { %4846 = vst [vmem:[#allocation6_spill] sm:$0xff] %v4488_v17  ;;  %v1940_v6 = vpop.f32.mrf.mxu1  ;;  %v4493_v26 = vadd.f32 %v1205_v23, %v1204_v18  ;;  %v1949_v55 = vadd.f32 %v4486_v16, %v4490_v22 }
 0x16d   : > { %v1683_v46 = vpop.f32.mrf.mxu0 }
 0x16e   : > { %4847 = vst [vmem:[#allocation7_spill] sm:$0xff] %v4493_v26  ;;  %v3431_v44 = vpop.f32.mrf.mxu1  ;;  %v1925_v26 = vadd.f32 %v4465_v49, %v4462_v42  ;;  %v1941_v39 = vadd.f32 %v1940_v6, %v1683_v46 }
 0x16f   : > { %v3401_v21 = vpop.f32.mrf.mxu0 }
 0x170   : > { %v1943_v28 = vpop.f32.mrf.mxu1 }
 0x171   : > { %v1686_v35 = vpop.f32.mrf.mxu0 }
 0x172   : > { %v4495_v3 = vpop.f32.mrf.mxu1 }
 0x173   : > { %v3404_v7 = vpop.f32.mrf.mxu0 }
 0x174   : > { %v1956_v56 = vpop.f32.mrf.mxu1 }
 0x175   : > { %v1699_v19 = vpop.f32.mrf.mxu0 }
 0x176   : > { %v3435_v60 = vpop.f32.mrf.mxu1 }
 0x177   : > { %v3405_v51 = vpop.f32.mrf.mxu0 }
 0x178   : > { %v1959_v20 = vpop.f32.mrf.mxu1 }
 0x179   : > { %v1702_v63 = vpop.f32.mrf.mxu0 }
 0x17a   : > { %v3438_v37 = vpop.f32.mrf.mxu1 }
 0x17c   : > { %v1972_v40 = vpop.f32.mrf.mxu1 }
 0x17d   : > { %v3408_v1 = vpop.f32.mrf.mxu0 }
 0x17e   : > { %v3439_v34 = vpop.f32.mrf.mxu1  ;;  %v4547_v16 = vadd.f32 %v3438_v37, %v3408_v1 }
 0x17f   : > { %v1715_v36 = vpop.f32.mrf.mxu0 }
 0x180   : > { %v1975_v43 = vpop.f32.mrf.mxu1  ;;  %v4549_v22 = vadd.f32 %v1972_v40, %v1715_v36 }
 0x181   : > { %v3409_v53 = vpop.f32.mrf.mxu0 }
 0x182   : > { %v4497_v24 = vpop.f32.mrf.mxu1 }
 0x183   : > { %v1718_v25 = vpop.f32.mrf.mxu0 }
 0x184   : > { %v1988_v59 = vpop.f32.mrf.mxu1 }
 0x185   : > { %v3412_v27 = vpop.f32.mrf.mxu0 }
 0x186   : > { %v3443_v29 = vpop.f32.mrf.mxu1 }
 0x187   : > { %v1731_v30 = vpop.f32.mrf.mxu0 }
 0x188   : > { %v4499_v31 = vpop.f32.mrf.mxu1 }
 0x189   : > { %v3413_v32 = vpop.f32.mrf.mxu0 }
 0x18a   : > { %v4501_v33 = vpop.f32.mrf.mxu1 }
 0x18b   : > { %v1734_v38 = vpop.f32.mrf.mxu0 }
 0x18c   : > { %v4503_v41 = vpop.f32.mrf.mxu1 }
 0x18e   : > { %v4505_v45 = vpop.f32.mrf.mxu1 }
 0x18f   : > { %v3416_v47 = vpop.f32.mrf.mxu0 }
 0x190   : > { %v4507_v48 = vpop.f32.mrf.mxu1 }
 0x191   : > { %4848 = vst [vmem:[#allocation8_spill] sm:$0xff] %v4507_v48  ;;  %v1747_v50 = vpop.f32.mrf.mxu0 }
 0x192   : > { %v4509_v54 = vpop.f32.mrf.mxu1  ;;  %v4573_v36 = vadd.f32 %v4503_v41, %v1747_v50 }
 0x193   : > { %4849 = vst [vmem:[#allocation9_spill] sm:$0xff] %v4509_v54  ;;  %v3417_v62 = vpop.f32.mrf.mxu0 }
 0x194   : > { %v4511_v61 = vpop.f32.mrf.mxu1 }
 0x195   : > { %4850 = vst [vmem:[#allocation10_spill] sm:$0xff] %v4511_v61  ;;  %v4513_v0 = vpop.f32.mrf.mxu0 }
 0x196   : > { %4851 = vst [vmem:[#allocation11_spill] sm:$0xff] %v4513_v0  ;;  %v4515_v5 = vpop.f32.mrf.mxu1  ;;  %v1944_v0 = vadd.f32 %v1943_v28, %v1686_v35 }
 0x197   : > { %4852 = vst [vmem:[#allocation12_spill] sm:$0xff] %v4515_v5  ;;  %v4517_v9 = vpop.f32.mrf.mxu0 }
 0x198   : > { %4853 = vst [vmem:[#allocation13_spill] sm:$0xff] %v4517_v9  ;;  %v4519_v57 = vpop.f32.mrf.mxu1  ;;  %v1952_v9 = vadd.f32 %v3431_v44, %v3401_v21  ;;  %v4552_v44 = vadd.f32 %v3439_v34, %v3409_v53  ;;  %v4554_v21 = vadd.f32 %v1975_v43, %v1718_v25  ;;  %v4570_v34 = vadd.f32 %v4501_v33, %v3416_v47 }
 0x199   : > { %4854 = vst [vmem:[#allocation14_spill] sm:$0xff] %v4519_v57  ;;  %v4521_v10 = vpop.f32.mrf.mxu0  ;;  %v1936_v57 = vadd.f32 %v4473_v4, %v4467_v52  ;;  %v4539_v52 = vadd.f32 %v4495_v3, %v3404_v7  ;;  %v4541_v4 = vadd.f32 %v1956_v56, %v1699_v19  ;;  %v4557_v7 = vadd.f32 %v4497_v24, %v3412_v27 }
 0x19a   : > { %4855 = vst [vmem:[#allocation15_spill] sm:$0xff] %v4521_v10  ;;  %v3486_v11 = vpop.f32.mrf.mxu1  ;;  %v4559_v56 = vadd.f32 %v1988_v59, %v1731_v30  ;;  %v4561_v19 = vadd.f32 %v3443_v29, %v3413_v32  ;;  %v4576_v43 = vadd.f32 %v4505_v45, %v3417_v62 }
 0x19b   : > { %v4523_v13 = vpop.f32.mrf.mxu0 }
 0x19c   : > { %4856 = vst [vmem:[#allocation16_spill] sm:$0xff] %v4523_v13  ;;  %v2242_v14 = vpop.f32.mrf.mxu1 }
 0x19d   : > { %v4525_v58 = vpop.f32.mrf.mxu0 }
 0x19e   : > { %4857 = vst [vmem:[#allocation17_spill] sm:$0xff] %v4525_v58  ;;  %v3487_v18 = vpop.f32.mrf.mxu1  ;;  %v1928_v58 = vadd.f32 %v4482_v12, %v4475_v8  ;;  %v4545_v8 = vadd.f32 %v1959_v20, %v1702_v63  ;;  %v4566_v20 = vadd.f32 %v4499_v31, %v1734_v38 }
 0x19f   : > { %v3456_v23 = vpop.f32.mrf.mxu0 }
 0x1a0   : > { %v2182_v17 = vadd.f32 %v3456_v23, %v1933_v15  ;;  %v2245_v5 = vpop.f32.mrf.mxu1 }
 0x1a1   : > { %v2069_v61 = vpop.f32.mrf.mxu0 }
 0x1a2   : > { %v2355_v10 = vadd.f32 %v3486_v11, %v2182_v17  ;;  %v2180_v54 = vadd.f32 %v2069_v61, %v1925_v26  ;;  %v3490_v13 = vpop.f32.mrf.mxu1  ;;  %v4543_v17 = vadd.f32 %v3435_v60, %v3405_v51 }
 0x1a3   : > { %v3457_v48 = vpop.f32.mrf.mxu0 }
 0x1a4   : > { %v2383_v42 = vadd.f32 %v4445_v2, %v2355_v10  ;;  %v2353_v49 = vadd.f32 %v2242_v14, %v2180_v54  ;;  %v2183_v15 = vadd.f32 %v3457_v48, %v1936_v57  ;;  %v2258_v23 = vpop.f32.mrf.mxu1 }
 0x1a5   : > { %v2072_v12 = vpop.f32.mrf.mxu0 }
 0x1a6   : > { %v3268_v6 = vpack.c.bf16 %v2383_v42, %v2383_v42  ;;  %v2381_v26 = vadd.f32 %v4445_v2, %v2353_v49  ;;  %v3491_v46 = vpop.f32.mrf.mxu1  ;;  %v2356_v28 = vadd.f32 %v3487_v18, %v2183_v15  ;;  %v2181_v35 = vadd.f32 %v2072_v12, %v1928_v58  ;;  %v4858_v18 = vld [vmem:[#allocation11_spill] sm:$0xff] }
 0x1a7   : > { %v3460_v3 = vpop.f32.mrf.mxu0  ;;  %v2552_v25 = vsel %vm1182_vm6, %v2383_v42, 0.0  ;;  %v2613_v31 = vmul.f32 %v2383_v42, %v2383_v42 }
 0x1a8   : > { %2523 = vst.msk [vmem:[%s4451_s20 + $0x8] sm:$0xf] %vm1177_vm5, %v3268_v6  ;;  %v3266_v60 = vpack.c.bf16 %v2381_v26, %v2381_v26  ;;  %v2261_v51 = vpop.f32.mrf.mxu1  ;;  %v2384_v63 = vadd.f32 %v4445_v2, %v2356_v28  ;;  %v2354_v37 = vadd.f32 %v2245_v5, %v2181_v35  ;;  %v2186_v40 = vadd.f32 %v3460_v3, %v1949_v55  ;;  %v4859_v55 = vld [vmem:[#allocation8_spill] sm:$0xff] }
 0x1a9   : > { %v2085_v1 = vpop.f32.mrf.mxu0  ;;  %v2611_v59 = vmul.f32 %v2381_v26, %v2381_v26  ;;  %v2549_v45 = vsel %vm1182_vm6, %v2381_v26, 0.0  ;;  %v2642_v12 = vsel %vm1182_vm6, %v2613_v31, 0.0 }
 0x1aa   : > { %2521 = vst.msk [vmem:[%s4451_s20] sm:$0xf] %vm1177_vm5, %v3266_v60  ;;  %v2184_v53 = vadd.f32 %v2085_v1, %v1941_v39  ;;  %v3494_v24 = vpop.f32.mrf.mxu1  ;;  %v3269_v27 = vpack.c.bf16 %v2384_v63, %v2384_v63  ;;  %v2382_v29 = vadd.f32 %v4445_v2, %v2354_v37  ;;  %v2359_v32 = vadd.f32 %v3490_v13, %v2186_v40 }
 0x1ab   : > { %v3461_v30 = vpop.f32.mrf.mxu0  ;;  %v2639_v11 = vsel %vm1182_vm6, %v2611_v59, 0.0  ;;  %v4594_v39 = vadd.f32 %v4859_v55, %v4858_v18  ;;  %v2554_v6 = vsel %vm1182_vm6, %v2384_v63, 0.0  ;;  %v4860_v59 = vld [vmem:[#allocation13_spill] sm:$0xff] }
 0x1ac   : > { %v2357_v33 = vadd.f32 %v2258_v23, %v2184_v53  ;;  %v2187_v38 = vadd.f32 %v3461_v30, %v1952_v9  ;;  %v2274_v41 = vpop.f32.mrf.mxu1  ;;  %2524 = vst.msk [vmem:[%s4451_s20 + $0xc] sm:$0xf] %vm1177_vm5, %v3269_v27  ;;  %v3267_v47 = vpack.c.bf16 %v2382_v29, %v2382_v29  ;;  %v2550_v48 = vsel %vm1182_vm6, %v2382_v29, 0.0  ;;  %v4861_v27 = vld [vmem:[#allocation9_spill] sm:$0xff] }
 0x1ad   : > { %v2612_v50 = vmul.f32 %v2382_v29, %v2382_v29  ;;  %v2088_v54 = vpop.f32.mrf.mxu0  ;;  %v2551_v62 = vadd.f32 %v2550_v48, %v2549_v45  ;;  %v2387_v61 = vadd.f32 %v4445_v2, %v2359_v32  ;;  %v2614_v9 = vmul.f32 %v2384_v63, %v2384_v63 }
 0x1ae   : > { %v2385_v5 = vadd.f32 %v4445_v2, %v2357_v33  ;;  %v2360_v57 = vadd.f32 %v3491_v46, %v2187_v38  ;;  %v3495_v10 = vpop.f32.mrf.mxu1  ;;  %2522 = vst.msk [vmem:[%s4451_s20 + $0x4] sm:$0xf] %vm1177_vm5, %v3267_v47  ;;  %v2185_v14 = vadd.f32 %v2088_v54, %v1944_v0  ;;  %v4609_v29 = vadd.f32 %v4861_v27, %v4860_v59 }
 0x1af   : > { %v2640_v13 = vsel %vm1182_vm6, %v2612_v50, 0.0  ;;  %v3464_v58 = vpop.f32.mrf.mxu0  ;;  %v2553_v42 = vadd.f32 %v2552_v25, %v2551_v62  ;;  %v3272_v15 = vpack.c.bf16 %v2387_v61, %v2387_v61  ;;  %v2644_v40 = vsel %vm1182_vm6, %v2614_v9, 0.0 }
 0x1b0   : > { %v2641_v49 = vadd.f32 %v2640_v13, %v2639_v11  ;;  %v2277_v23 = vpop.f32.mrf.mxu1  ;;  %v3270_v26 = vpack.c.bf16 %v2385_v5, %v2385_v5  ;;  %v2615_v46 = vmul.f32 %v2385_v5, %v2385_v5  ;;  %v2388_v3 = vadd.f32 %v4445_v2, %v2360_v57 }
 0x1b1   : > { %v2101_v28 = vpop.f32.mrf.mxu0  ;;  %2527 = vst.msk [vmem:[%s4451_s20 + $0x18] sm:$0xf] %vm1177_vm5, %v3272_v15  ;;  %v2555_v0 = vadd.f32 %v2554_v6, %v2553_v42  ;;  %v2358_v60 = vadd.f32 %v2261_v51, %v2185_v14  ;;  %v2556_v1 = vsel %vm1182_vm6, %v2385_v5, 0.0  ;;  %v2190_v63 = vadd.f32 %v3464_v58, %v4539_v52 }
 0x1b2   : > { %v2643_v35 = vadd.f32 %v2642_v12, %v2641_v49  ;;  %v3498_v37 = vpop.f32.mrf.mxu1  ;;  %2525 = vst.msk [vmem:[%s4451_s20 + $0x10] sm:$0xf] %vm1177_vm5, %v3270_v26  ;;  %v2188_v53 = vadd.f32 %v2101_v28, %v4541_v4  ;;  %v3273_v51 = vpack.c.bf16 %v2388_v3, %v2388_v3  ;;  %v2646_v33 = vsel %vm1182_vm6, %v2615_v46, 0.0 }
 0x1b3   : > { %v3465_v25 = vpop.f32.mrf.mxu0  ;;  %v2557_v30 = vadd.f32 %v2556_v1, %v2555_v0  ;;  %v2386_v38 = vadd.f32 %v4445_v2, %v2358_v60  ;;  %v2363_v45 = vadd.f32 %v3494_v24, %v2190_v63  ;;  %v2617_v52 = vmul.f32 %v2387_v61, %v2387_v61 }
 0x1b4   : > { %v2645_v31 = vadd.f32 %v2644_v40, %v2643_v35  ;;  %v4611_v32 = vpop.f32.mrf.mxu1  ;;  %v2361_v47 = vadd.f32 %v2274_v41, %v2188_v53  ;;  %2528 = vst.msk [vmem:[%s4451_s20 + $0x1c] sm:$0xf] %vm1177_vm5, %v3273_v51  ;;  %v2191_v4 = vadd.f32 %v3465_v25, %v4543_v17  ;;  %v2618_v5 = vmul.f32 %v2388_v3, %v2388_v3 }
 0x1b5   : > { %v2104_v48 = vpop.f32.mrf.mxu0  ;;  %v3271_v57 = vpack.c.bf16 %v2386_v38, %v2386_v38  ;;  %v2558_v11 = vsel %vm1182_vm6, %v2386_v38, 0.0  ;;  %v2616_v9 = vmul.f32 %v2386_v38, %v2386_v38  ;;  %v2391_v41 = vadd.f32 %v4445_v2, %v2363_v45 }
 0x1b6   : > { %v2647_v50 = vadd.f32 %v2646_v33, %v2645_v31  ;;  %v2189_v54 = vadd.f32 %v2104_v48, %v4545_v8  ;;  %v4619_v62 = vpop.f32.mrf.mxu1  ;;  %v2559_v24 = vadd.f32 %v2558_v11, %v2557_v30  ;;  %v2389_v14 = vadd.f32 %v4445_v2, %v2361_v47 }
 0x1b7   : > { %v3468_v13 = vpop.f32.mrf.mxu0  ;;  %v2364_v58 = vadd.f32 %v3495_v10, %v2191_v4  ;;  %v2560_v55 = vsel %vm1182_vm6, %v2387_v61, 0.0  ;;  %2526 = vst.msk [vmem:[%s4451_s20 + $0x14] sm:$0xf] %vm1177_vm5, %v3271_v57  ;;  %v2648_v17 = vsel %vm1182_vm6, %v2616_v9, 0.0  ;;  %v2650_v15 = vsel %vm1182_vm6, %v2617_v52, 0.0 }
 0x1b8   : > { %v2293_v18 = vpop.f32.mrf.mxu1  ;;  %v2362_v8 = vadd.f32 %v2277_v23, %v2189_v54  ;;  %v2194_v42 = vadd.f32 %v3468_v13, %v4547_v16  ;;  %v2561_v12 = vadd.f32 %v2560_v55, %v2559_v24  ;;  %v2649_v6 = vadd.f32 %v2648_v17, %v2647_v50 }
 0x1b9   : > { %v2117_v49 = vpop.f32.mrf.mxu0  ;;  %v3276_v26 = vpack.c.bf16 %v2391_v41, %v2391_v41  ;;  %v2562_v10 = vsel %vm1182_vm6, %v2388_v3, 0.0  ;;  %v2652_v61 = vsel %vm1182_vm6, %v2618_v5, 0.0  ;;  %v3274_v28 = vpack.c.bf16 %v2389_v14, %v2389_v14 }
 0x1ba   : > { %v4630_v46 = vpop.f32.mrf.mxu1  ;;  %v2619_v35 = vmul.f32 %v2389_v14, %v2389_v14  ;;  %v2651_v60 = vadd.f32 %v2650_v15, %v2649_v6  ;;  %v2563_v16 = vadd.f32 %v2562_v10, %v2561_v12  ;;  %v2392_v23 = vadd.f32 %v4445_v2, %v2364_v58 }
 0x1bb   : > { %v3469_v0 = vpop.f32.mrf.mxu0  ;;  %2531 = vst.msk [vmem:[%s4451_s20 + $0x28] sm:$0xf] %vm1177_vm5, %v3276_v26  ;;  %v2390_v40 = vadd.f32 %v4445_v2, %v2362_v8  ;;  %v2568_v63 = vsel %vm1182_vm6, %v2391_v41, 0.0  ;;  %2529 = vst.msk [vmem:[%s4451_s20 + $0x20] sm:$0xf] %vm1177_vm5, %v3274_v28  ;;  %v2564_v3 = vsel %vm1182_vm6, %v2389_v14, 0.0  ;;  %v2367_v53 = vadd.f32 %v3498_v37, %v2194_v42 }
 0x1bc   : > { %v2306_v1 = vpop.f32.mrf.mxu1  ;;  %v2192_v25 = vadd.f32 %v2117_v49, %v4549_v22  ;;  %v2621_v27 = vmul.f32 %v2391_v41, %v2391_v41  ;;  %v2565_v30 = vadd.f32 %v2564_v3, %v2563_v16  ;;  %v2653_v31 = vadd.f32 %v2652_v61, %v2651_v60  ;;  %v4863_v3 = vld [vmem:[#allocation10_spill] sm:$0xff] }
 0x1bd   : > { %v2120_v59 = vpop.f32.mrf.mxu0  ;;  %v3277_v51 = vpack.c.bf16 %v2392_v23, %v2392_v23  ;;  %v2654_v38 = vsel %vm1182_vm6, %v2619_v35, 0.0  ;;  %v3275_v45 = vpack.c.bf16 %v2390_v40, %v2390_v40  ;;  %v2566_v47 = vsel %vm1182_vm6, %v2390_v40, 0.0 }
 0x1be   : > { %v4643_v33 = vpop.f32.mrf.mxu1  ;;  %v2620_v48 = vmul.f32 %v2390_v40, %v2390_v40  ;;  %v2655_v50 = vadd.f32 %v2654_v38, %v2653_v31  ;;  %v2567_v37 = vadd.f32 %v2566_v47, %v2565_v30  ;;  %v2395_v22 = vadd.f32 %v4445_v2, %v2367_v53  ;;  %v4865_v47 = vld [vmem:[#allocation12_spill] sm:$0xff] }
 0x1bf   : > { %v3472_v52 = vpop.f32.mrf.mxu0  ;;  %2532 = vst.msk [vmem:[%s4451_s20 + $0x2c] sm:$0xf] %vm1177_vm5, %v3277_v51  ;;  %v2365_v4 = vadd.f32 %v4611_v32, %v2192_v25  ;;  %v2622_v5 = vmul.f32 %v2392_v23, %v2392_v23  ;;  %2530 = vst.msk [vmem:[%s4451_s20 + $0x24] sm:$0xf] %vm1177_vm5, %v3275_v45  ;;  %v2195_v11 = vadd.f32 %v3469_v0, %v4552_v44  ;;  %v2658_v24 = vsel %vm1182_vm6, %v2621_v27, 0.0 }
 0x1c0   : > { %v4651_v54 = vpop.f32.mrf.mxu1  ;;  %v2656_v57 = vsel %vm1182_vm6, %v2620_v48, 0.0  ;;  %v2193_v9 = vadd.f32 %v2120_v59, %v4554_v21  ;;  %v2569_v41 = vadd.f32 %v2568_v63, %v2567_v37  ;;  %v3280_v58 = vpack.c.bf16 %v2395_v22, %v2395_v22  ;;  %v4862_v63 = vld [vmem:[#allocation15_spill] sm:$0xff] }
 0x1c1   : > { %v2133_v13 = vpop.f32.mrf.mxu0  ;;  %v2657_v14 = vadd.f32 %v2656_v57, %v2655_v50  ;;  %v2570_v32 = vsel %vm1182_vm6, %v2392_v23, 0.0  ;;  %v2393_v17 = vadd.f32 %v4445_v2, %v2365_v4  ;;  %v2368_v8 = vadd.f32 %v4619_v62, %v2195_v11 }
 0x1c2   : > { %v4659_v55 = vpop.f32.mrf.mxu1  ;;  %v2366_v42 = vadd.f32 %v2293_v18, %v2193_v9  ;;  %2535 = vst.msk [vmem:[%s4451_s20 + $0x40] sm:$0xf] %vm1177_vm5, %v3280_v58  ;;  %v2571_v21 = vadd.f32 %v2570_v32, %v2569_v41  ;;  %v2198_v15 = vadd.f32 %v3472_v52, %v4557_v7  ;;  %v2196_v12 = vadd.f32 %v2133_v13, %v4559_v56 }
 0x1c3   : > { %v3473_v49 = vpop.f32.mrf.mxu0  ;;  %v2659_v44 = vadd.f32 %v2658_v24, %v2657_v14  ;;  %v2660_v26 = vsel %vm1182_vm6, %v2622_v5, 0.0  ;;  %v3278_v10 = vpack.c.bf16 %v2393_v17, %v2393_v17  ;;  %v2572_v61 = vsel %vm1182_vm6, %v2393_v17, 0.0 }
 0x1c4   : > { %v4668_v6 = vpop.f32.mrf.mxu1  ;;  %v2623_v28 = vmul.f32 %v2393_v17, %v2393_v17  ;;  %v2573_v18 = vadd.f32 %v2572_v61, %v2571_v21  ;;  %v2396_v0 = vadd.f32 %v4445_v2, %v2368_v8  ;;  %v2394_v60 = vadd.f32 %v4445_v2, %v2366_v42  ;;  %v4866_v21 = vld [vmem:[#allocation17_spill] sm:$0xff] }
 0x1c5   : > { %v2136_v62 = vpop.f32.mrf.mxu0  ;;  %v2661_v35 = vadd.f32 %v2660_v26, %v2659_v44  ;;  %2533 = vst.msk [vmem:[%s4451_s20 + $0x30] sm:$0xf] %vm1177_vm5, %v3278_v10  ;;  %v2371_v56 = vadd.f32 %v4630_v46, %v2198_v15  ;;  %v2369_v16 = vadd.f32 %v2306_v1, %v2196_v12  ;;  %v2199_v23 = vadd.f32 %v3473_v49, %v4561_v19  ;;  %v4864_v1 = vld [vmem:[#allocation16_spill] sm:$0xff]  ;;  %v4867_v15 = vld [vmem:[#allocation14_spill] sm:$0xff] }
 0x1c6   : > { %v2662_v7 = vsel %vm1182_vm6, %v2623_v28, 0.0  ;;  %v4681_v53 = vadd.f32 %v4863_v3, %v4862_v63  ;;  %v2625_v25 = vmul.f32 %v2395_v22, %v2395_v22  ;;  %v3281_v27 = vpack.c.bf16 %v2396_v0, %v2396_v0  ;;  %v3507_v30 = vpop.f32.mrf.mxu1 }
 0x1c7   : > { %v3476_v40 = vpop.f32.mrf.mxu0  ;;  %v2663_v59 = vadd.f32 %v2662_v7, %v2661_v35  ;;  %v3279_v31 = vpack.c.bf16 %v2394_v60, %v2394_v60  ;;  %v2574_v51 = vsel %vm1182_vm6, %v2394_v60, 0.0  ;;  %v2624_v38 = vmul.f32 %v2394_v60, %v2394_v60 }
 0x1c8   : > { %v2399_v45 = vadd.f32 %v4445_v2, %v2371_v56  ;;  %v4687_v19 = vadd.f32 %v4865_v47, %v4864_v1  ;;  %2536 = vst.msk [vmem:[%s4451_s20 + $0x44] sm:$0xf] %vm1177_vm5, %v3281_v27  ;;  %v2575_v48 = vadd.f32 %v2574_v51, %v2573_v18  ;;  %v2397_v52 = vadd.f32 %v4445_v2, %v2369_v16  ;;  %v2325_v14 = vpop.f32.mrf.mxu1 }
 0x1c9   : > { %v2149_v46 = vpop.f32.mrf.mxu0  ;;  %v2372_v50 = vadd.f32 %v4643_v33, %v2199_v23  ;;  %v2576_v37 = vsel %vm1182_vm6, %v2395_v22, 0.0  ;;  %v2626_v4 = vmul.f32 %v2396_v0, %v2396_v0  ;;  %2534 = vst.msk [vmem:[%s4451_s20 + $0x34] sm:$0xf] %vm1177_vm5, %v3279_v31  ;;  %v2664_v5 = vsel %vm1182_vm6, %v2624_v38, 0.0 }
 0x1ca   : > { %v3284_v57 = vpack.c.bf16 %v2399_v45, %v2399_v45  ;;  %v2666_v9 = vsel %vm1182_vm6, %v2625_v25, 0.0  ;;  %v2577_v13 = vadd.f32 %v2576_v37, %v2575_v48  ;;  %v2665_v24 = vadd.f32 %v2664_v5, %v2663_v59 }
 0x1cb   : > { %v3477_v11 = vpop.f32.mrf.mxu0  ;;  %v3282_v41 = vpack.c.bf16 %v2397_v52, %v2397_v52  ;;  %v2578_v58 = vsel %vm1182_vm6, %v2396_v0, 0.0  ;;  %v2627_v33 = vmul.f32 %v2397_v52, %v2397_v52  ;;  %v2400_v22 = vadd.f32 %v4445_v2, %v2372_v50  ;;  %v3510_v0 = vpop.f32.mrf.mxu1 }
 0x1cc   : > { %2539 = vst.msk [vmem:[%s4451_s20 + $0x50] sm:$0xf] %vm1177_vm5, %v3284_v57  ;;  %v2197_v32 = vadd.f32 %v2136_v62, %v4566_v20  ;;  %v2667_v8 = vadd.f32 %v2666_v9, %v2665_v24  ;;  %v2579_v42 = vadd.f32 %v2578_v58, %v2577_v13  ;;  %v2202_v49 = vadd.f32 %v3476_v40, %v4570_v34 }
 0x1cd   : > { %v2152_v17 = vpop.f32.mrf.mxu0  ;;  %2537 = vst.msk [vmem:[%s4451_s20 + $0x48] sm:$0xf] %vm1177_vm5, %v3282_v41  ;;  %v2200_v44 = vadd.f32 %v2149_v46, %v4573_v36  ;;  %v4709_v12 = vadd.f32 %v4867_v15, %v4866_v21  ;;  %v2668_v26 = vsel %vm1182_vm6, %v2626_v4, 0.0  ;;  %v2629_v10 = vmul.f32 %v2399_v45, %v2399_v45  ;;  %v2338_v27 = vpop.f32.mrf.mxu1 }
 0x1ce   : > { %v3285_v61 = vpack.c.bf16 %v2400_v22, %v2400_v22  ;;  %v2580_v20 = vsel %vm1182_vm6, %v2397_v52, 0.0  ;;  %v2669_v62 = vadd.f32 %v2668_v26, %v2667_v8  ;;  %v2370_v18 = vadd.f32 %v4651_v54, %v2197_v32 }
 0x1cf   : > { %v3480_v28 = vpop.f32.mrf.mxu0  ;;  %v2375_v35 = vadd.f32 %v4659_v55, %v2202_v49  ;;  %v2581_v34 = vadd.f32 %v2580_v20, %v2579_v42  ;;  %v2373_v36 = vadd.f32 %v4668_v6, %v2200_v44  ;;  %v2203_v60 = vadd.f32 %v3477_v11, %v4576_v43  ;;  %v3511_v13 = vpop.f32.mrf.mxu1 }
 0x1d0   : > { %2540 = vst.msk [vmem:[%s4451_s20 + $0x54] sm:$0xf] %vm1177_vm5, %v3285_v61  ;;  %v2201_v7 = vadd.f32 %v2152_v17, %v4594_v39  ;;  %v2670_v16 = vsel %vm1182_vm6, %v2627_v33, 0.0  ;;  %v2630_v23 = vmul.f32 %v2400_v22, %v2400_v22  ;;  %v2398_v40 = vadd.f32 %v4445_v2, %v2370_v18 }
 0x1d1   : > { %v2165_v56 = vpop.f32.mrf.mxu0  ;;  %v2403_v54 = vadd.f32 %v4445_v2, %v2375_v35  ;;  %v2671_v55 = vadd.f32 %v2670_v16, %v2669_v62  ;;  %v2401_v63 = vadd.f32 %v4445_v2, %v2373_v36  ;;  %v2376_v3 = vadd.f32 %v3507_v30, %v2203_v60 }
 0x1d2   : > { %v2374_v25 = vadd.f32 %v2325_v14, %v2201_v7  ;;  %v3283_v6 = vpack.c.bf16 %v2398_v40, %v2398_v40  ;;  %v2582_v43 = vsel %vm1182_vm6, %v2398_v40, 0.0  ;;  %v2628_v59 = vmul.f32 %v2398_v40, %v2398_v40 }
 0x1d3   : > { %v3288_v39 = vpack.c.bf16 %v2403_v54, %v2403_v54  ;;  %v3481_v31 = vpop.f32.mrf.mxu0  ;;  %v2584_v51 = vsel %vm1182_vm6, %v2399_v45, 0.0  ;;  %v2674_v38 = vsel %vm1182_vm6, %v2629_v10, 0.0  ;;  %v2583_v46 = vadd.f32 %v2582_v43, %v2581_v34  ;;  %v2341_v10 = vpop.f32.mrf.mxu1 }
 0x1d4   : > { %v3286_v1 = vpack.c.bf16 %v2401_v63, %v2401_v63  ;;  %2538 = vst.msk [vmem:[%s4451_s20 + $0x4c] sm:$0xf] %vm1177_vm5, %v3283_v6  ;;  %v2672_v47 = vsel %vm1182_vm6, %v2628_v59, 0.0  ;;  %v2404_v30 = vadd.f32 %v4445_v2, %v2376_v3  ;;  %v2206_v48 = vadd.f32 %v3480_v28, %v4609_v29 }
 0x1d5   : > { %2543 = vst.msk [vmem:[%s4451_s20 + $0x60] sm:$0xf] %vm1177_vm5, %v3288_v39  ;;  %v2204_v52 = vadd.f32 %v2165_v56, %v4681_v53  ;;  %v2586_v50 = vsel %vm1182_vm6, %v2400_v22, 0.0  ;;  %v2585_v45 = vadd.f32 %v2584_v51, %v2583_v46  ;;  %v2673_v37 = vadd.f32 %v2672_v47, %v2671_v55  ;;  %v2168_v24 = vpop.f32.mrf.mxu0 }
 0x1d6   : > { %2541 = vst.msk [vmem:[%s4451_s20 + $0x58] sm:$0xf] %vm1177_vm5, %v3286_v1  ;;  %v2402_v4 = vadd.f32 %v4445_v2, %v2374_v25  ;;  %v2676_v5 = vsel %vm1182_vm6, %v2630_v23, 0.0  ;;  %v2633_v57 = vmul.f32 %v2403_v54, %v2403_v54  ;;  %v2631_v11 = vmul.f32 %v2401_v63, %v2401_v63  ;;  %v4868_v23 = vld [vmem:[#allocation6_spill] sm:$0xff] }
 0x1d7   : > { %v3289_v9 = vpack.c.bf16 %v2404_v30, %v2404_v30  ;;  %v2675_v29 = vadd.f32 %v2674_v38, %v2673_v37  ;;  %v2587_v41 = vadd.f32 %v2586_v50, %v2585_v45  ;;  %v2588_v53 = vsel %vm1182_vm6, %v2401_v63, 0.0 }
 0x1d8   : > { %v3287_v14 = vpack.c.bf16 %v2402_v4, %v2402_v4  ;;  %v2590_v58 = vsel %vm1182_vm6, %v2402_v4, 0.0  ;;  %v2632_v33 = vmul.f32 %v2402_v4, %v2402_v4  ;;  %v2379_v22 = vadd.f32 %v3510_v0, %v2206_v48 }
 0x1d9   : > { %2544 = vst.msk [vmem:[%s4451_s20 + $0x64] sm:$0xf] %vm1177_vm5, %v3289_v9  ;;  %v2377_v32 = vadd.f32 %v2338_v27, %v2204_v52  ;;  %v2589_v17 = vadd.f32 %v2588_v53, %v2587_v41  ;;  %v2677_v8 = vadd.f32 %v2676_v5, %v2675_v29  ;;  %v2207_v42 = vadd.f32 %v3481_v31, %v4687_v19 }
 0x1da   : > { %2542 = vst.msk [vmem:[%s4451_s20 + $0x5c] sm:$0xf] %vm1177_vm5, %v3287_v14  ;;  %v2205_v49 = vadd.f32 %v2168_v24, %v4709_v12  ;;  %v2678_v44 = vsel %vm1182_vm6, %v2631_v11, 0.0  ;;  %v2680_v21 = vsel %vm1182_vm6, %v2632_v33, 0.0  ;;  %v2407_v15 = vadd.f32 %v4445_v2, %v2379_v22 }
 0x1db   : > { %v2405_v26 = vadd.f32 %v4445_v2, %v2377_v32  ;;  %v2679_v61 = vadd.f32 %v2678_v44, %v2677_v8  ;;  %v2591_v28 = vadd.f32 %v2590_v58, %v2589_v17  ;;  %v2380_v20 = vadd.f32 %v3511_v13, %v2207_v42 }
 0x1dc   : > { %v2378_v62 = vadd.f32 %v2341_v10, %v2205_v49  ;;  %v2592_v18 = vsel %vm1182_vm6, %v2403_v54, 0.0  ;;  %v2634_v19 = vmul.f32 %v2404_v30, %v2404_v30  ;;  %v3292_v35 = vpack.c.bf16 %v2407_v15, %v2407_v15  ;;  %v4869_v54 = vld [vmem:[#allocation7_spill] sm:$0xff] }
 0x1dd   : > { %v3290_v12 = vpack.c.bf16 %v2405_v26, %v2405_v26  ;;  %v2682_v0 = vsel %vm1182_vm6, %v2633_v57, 0.0  ;;  %v2593_v34 = vadd.f32 %v2592_v18, %v2591_v28  ;;  %v2681_v36 = vadd.f32 %v2680_v21, %v2679_v61  ;;  %v2742_v18 = vld [vmem:[%s4451_s20] sm:$0xff] (%p3893_p9)  }
 0x1de   : > { %v2594_v60 = vsel %vm1182_vm6, %v2404_v30, 0.0  ;;  %2547 = vst.msk [vmem:[%s4451_s20 + $0x70] sm:$0xf] %vm1177_vm5, %v3292_v35  ;;  %v2635_v7 = vmul.f32 %v2405_v26, %v2405_v26  ;;  %v2408_v56 = vadd.f32 %v4445_v2, %v2380_v20  ;;  %v2406_v16 = vadd.f32 %v4445_v2, %v2378_v62  ;;  %v2750_v35 = vld [vmem:[%s4451_s20 + $0x10] sm:$0xff] (%p3893_p9)   ;;  %2743 = vst [vmem:[%s2725_s30] sm:$0xff] (%p3893_p9), %v2742_v18  }
 0x1df   : > { %2545 = vst.msk [vmem:[%s4451_s20 + $0x68] sm:$0xf] %vm1177_vm5, %v3290_v12  ;;  %v1190_v40 = vrot.slane %v4868_v23, 4  ;;  %v1207_v55 = vrot.slane %v4869_v54, 4  ;;  %v2683_v63 = vadd.f32 %v2682_v0, %v2681_v36  ;;  %v2595_v3 = vadd.f32 %v2594_v60, %v2593_v34  ;;  %v2754_v12 = vld [vmem:[%s4451_s20 + $0x18] sm:$0xff] (%p3893_p9)   ;;  %v2758_v0 = vld [vmem:[%s4451_s20 + $0x20] sm:$0xff] (%p3893_p9)  }
 0x1e0   : > { %v2684_v25 = vsel %vm1182_vm6, %v2634_v19, 0.0  ;;  %v2596_v6 = vsel %vm1182_vm6, %v2405_v26, 0.0  ;;  %v3293_v43 = vpack.c.bf16 %v2408_v56, %v2408_v56  ;;  %v3291_v59 = vpack.c.bf16 %v2406_v16, %v2406_v16  ;;  %v2746_v19 = vld [vmem:[%s4451_s20 + $0x8] sm:$0xff] (%p3893_p9)   ;;  %2751 = vst [vmem:[%s2725_s30 + $0x10] sm:$0xff] (%p3893_p9), %v2750_v35   ;;  %2755 = vst [vmem:[%s2725_s30 + $0x18] sm:$0xff] (%p3893_p9), %v2754_v12   ;;  %v2766_v36 = vld [vmem:[%s4451_s20 + $0x30] sm:$0xff] (%p3893_p9)  }
 0x1e1   : > { %v2597_v39 = vadd.f32 %v2596_v6, %v2595_v3  ;;  %v2685_v27 = vadd.f32 %v2684_v25, %v2683_v63  ;;  %v2598_v31 = vsel %vm1182_vm6, %v2406_v16, 0.0  ;;  %v2636_v51 = vmul.f32 %v2406_v16, %v2406_v16  ;;  %v2762_v34 = vld [vmem:[%s4451_s20 + $0x28] sm:$0xff] (%p3893_p9)   ;;  %2747 = vst [vmem:[%s2725_s30 + $0x8] sm:$0xff] (%p3893_p9), %v2746_v19   ;;  %2759 = vst [vmem:[%s2725_s30 + $0x20] sm:$0xff] (%p3893_p9), %v2758_v0   ;;  %v2770_v60 = vld [vmem:[%s4451_s20 + $0x38] sm:$0xff] (%p3893_p9)  }
 0x1e2   : > { %v2637_v38 = vmul.f32 %v2407_v15, %v2407_v15  ;;  %v2686_v2 = vsel %vm1182_vm6, %v2635_v7, 0.0  ;;  %2548 = vst.msk [vmem:[%s4451_s20 + $0x74] sm:$0xf] %vm1177_vm5, %v3293_v43  ;;  %2546 = vst.msk [vmem:[%s4451_s20 + $0x6c] sm:$0xf] %vm1177_vm5, %v3291_v59  ;;  %v1191_v46 = vadd.f32 %v1190_v40, %v4868_v23  ;;  %v2600_v48 = vsel %vm1182_vm6, %v2407_v15, 0.0 }
 0x1e3   : > { %v2687_v1 = vadd.f32 %v2686_v2, %v2685_v27  ;;  %v2599_v47 = vadd.f32 %v2598_v31, %v2597_v39  ;;  %v2688_v30 = vsel %vm1182_vm6, %v2636_v51, 0.0  ;;  %v2638_v52 = vmul.f32 %v2408_v56, %v2408_v56  ;;  %2763 = vst [vmem:[%s2725_s30 + $0x28] sm:$0xff] (%p3893_p9), %v2762_v34   ;;  %v2774_v7 = vld [vmem:[%s4451_s20 + $0x40] sm:$0xff] (%p3893_p9)   ;;  %2767 = vst [vmem:[%s2725_s30 + $0x30] sm:$0xff] (%p3893_p9), %v2766_v36   ;;  %v2782_v16 = vld [vmem:[%s4451_s20 + $0x50] sm:$0xff] (%p3893_p9)  }
 0x1e4   : > { %v1208_v50 = vadd.f32 %v1207_v55, %v4869_v54  ;;  %v2690_v4 = vsel %vm1182_vm6, %v2637_v38, 0.0  ;;  %v2602_v5 = vsel %vm1182_vm6, %v2408_v56, 0.0  ;;  %v1192_v57 = vrot.slane %v1191_v46, 2  ;;  %2771 = vst [vmem:[%s2725_s30 + $0x38] sm:$0xff] (%p3893_p9), %v2770_v60   ;;  %2775 = vst [vmem:[%s2725_s30 + $0x80] sm:$0xff] (%p3893_p9), %v2774_v7   ;;  %v2778_v56 = vld [vmem:[%s4451_s20 + $0x48] sm:$0xff] (%p3893_p9)  }
 0x1e5   : > { %v2601_v45 = vadd.f32 %v2600_v48, %v2599_v47  ;;  %v2689_v37 = vadd.f32 %v2688_v30, %v2687_v1  ;;  %v2692_v13 = vsel %vm1182_vm6, %v2638_v52, 0.0  ;;  %v2786_v23 = vld [vmem:[%s4451_s20 + $0x58] sm:$0xff] (%p3893_p9)   ;;  %2779 = vst [vmem:[%s2725_s30 + $0x88] sm:$0xff] (%p3893_p9), %v2778_v56   ;;  %2783 = vst [vmem:[%s2725_s30 + $0x90] sm:$0xff] (%p3893_p9), %v2782_v16   ;;  %v2790_v40 = vld [vmem:[%s4451_s20 + $0x60] sm:$0xff] (%p3893_p9)  }
 0x1e6   : > { %v1209_v24 = vrot.slane %v1208_v50, 2  ;;  %v1193_v53 = vadd.f32 %v1192_v57, %v1191_v46  ;;  %2787 = vst [vmem:[%s2725_s30 + $0x98] sm:$0xff] (%p3893_p9), %v2786_v23   ;;  %2791 = vst [vmem:[%s2725_s30 + $0xa0] sm:$0xff] (%p3893_p9), %v2790_v40   ;;  %v2802_v63 = vld [vmem:[%s4451_s20 + $0x78] sm:$0xff] (%p3893_p9)  }
 0x1e7   : > { %v2603_v11 = vadd.f32 %v2602_v5, %v2601_v45  ;;  %v2691_v9 = vadd.f32 %v2690_v4, %v2689_v37  ;;  %2803 = vst [vmem:[%s2725_s30 + $0xb8] sm:$0xff] (%p3893_p9), %v2802_v63  }
 0x1e8   : > { %v1210_v33 = vadd.f32 %v1209_v24, %v1208_v50  ;;  %v1194_v17 = vrot.slane %v1193_v53, 1 }
 0x1e9   : > { %v2604_v29 = vrot.slane %v2603_v11, 4  ;;  %v2693_v41 = vadd.f32 %v2692_v13, %v2691_v9  ;;  %v2794_v54 = vld [vmem:[%s4451_s20 + $0x68] sm:$0xff] (%p3893_p9)   ;;  %v2798_v55 = vld [vmem:[%s4451_s20 + $0x70] sm:$0xff] (%p3893_p9)  }
 0x1ea   : > { %v1211_v49 = vrot.slane %v1210_v33, 1  ;;  %v1195_v15 = vadd.f32 %v1194_v17, %v1193_v53  ;;  %2795 = vst [vmem:[%s2725_s30 + $0xa8] sm:$0xff] (%p3893_p9), %v2794_v54   ;;  %2799 = vst [vmem:[%s2725_s30 + $0xb0] sm:$0xff] (%p3893_p9), %v2798_v55  }
 0x1eb   : > { %v2605_v14 = vadd.f32 %v2604_v29, %v2603_v11  ;;  %v2694_v58 = vrot.slane %v2693_v41, 4 }
 0x1ec   : > { %v1212_v61 = vadd.f32 %v1211_v49, %v1210_v33 }
 0x1ed   : > { %v2606_v22 = vrot.slane %v2605_v14, 2  ;;  %v2695_v32 = vadd.f32 %v2694_v58, %v2693_v41 }
 0x1ef   : > { %v2607_v8 = vadd.f32 %v2606_v22, %v2605_v14  ;;  %v2696_v42 = vrot.slane %v2695_v32, 2 }
 0x1f1   : > { %v2608_v44 = vrot.slane %v2607_v8, 1  ;;  %v2697_v21 = vadd.f32 %v2696_v42, %v2695_v32 }
 0x1f3   : > { %v2609_v26 = vadd.f32 %v2608_v44, %v2607_v8  ;;  %v2698_v10 = vrot.slane %v2697_v21, 1 }
 0x1f5   : > { %v2610_v28 = vadd.f32 %v2609_v26, %v1195_v15  ;;  %v2699_v20 = vadd.f32 %v2698_v10, %v2697_v21  ;;  %2718 = sbr.rel (!%p3893_p9) target bundleno = 506 (0x1fa), region = 143 }
 0x1f7   : > { %v2700_v62 = vadd.f32 %v2699_v20, %v1212_v61  ;;  %2702 = vst.msk [vmem:[%s713_s16] sm:$0x1] %vm2701_vm7, %v2610_v28 }
 0x1f9   : > { %2703 = vst.msk [vmem:[%s713_s16 + $0x1] sm:$0x1] %vm2701_vm7, %v2700_v62 }
 0x1fa PF: > { %s16_s24 = sadd.s32 1, %s3754_s24   ;;  %s4870_s14 = sld [smem:[#allocation5_spill]] }
 0x1fb   : > { %p13_p7 = scmp.ge.s32.totalorder %s16_s24, 4   ;;  %s4871_s18 = smov %s3734_s19 }
 0x1fc   : > { %s4872_s19 = smov %s3888_s13  ;;  %s4873_s20 = smov %s3742_s21 }
 0x1fd   : > { %s4874_s21 = smov %s3877_s10  ;;  %s4875_s22 = smov %s3750_s23 }
 0x1fe   :  { %15 = sbr.rel (!%p13_p7) target bundleno = 6 (0x6), region = 275 }
 0x200   : > { %s4876_s23 = smov %s4870_s14 }

</bundles_post_ra>
